<compile_context>
chip_gen: v6e
topology: v6e:2x2x1
jax: 0.10.0
libtpu: 0.0.40
codegen_flags: <defaults>
</compile_context>

<pallas_src>
import numpy as np
import jax
import jax.numpy as jnp
from jax import lax
from jax.experimental import pallas as pl
from jax.experimental.pallas import tpu as pltpu

# ---- module defaults (from PseGru.__init__) ----
INPUT_DIM = 10
MLP1 = [10, 32, 64]
EXTRA = 4
MLP2_IN = 2 * MLP1[-1] + EXTRA   # mean_std pooling (128) + extra (4) = 132
MLP2_OUT = 128
HIDDEN = 128
MLP4 = [128, 64, 32]
NUM_CLASSES = 20
PAD_CLASSES = 128                # lane-dense logits store; sliced to 20 in the wrapper


# ---------------------------------------------------------------------------
# Kernel 1: Pixel-Set Encoder (TILE_N samples per grid step)
# ---------------------------------------------------------------------------
def pse_kernel(pix_ref, mask_ref, extra_ref,
               w1a_ref, b1a_ref, w1b_ref, b1b_ref,
               w2ms_ref, w2e_ref, b2_ref,
               out_ref, ms_ref):
    TN, S, C = pix_ref.shape
    F = w1b_ref.shape[-1]
    E = w2e_ref.shape[0]

    # MLP1 (Linear + folded BatchNorm + ReLU) over the flattened pixel slab
    x = pix_ref[...].reshape(TN * S, C)                                    # (TN*S, C)
    h = jnp.maximum(
        jnp.dot(x, w1a_ref[...], preferred_element_type=jnp.float32) + b1a_ref[...], 0.0)
    h = jnp.maximum(
        jnp.dot(h, w1b_ref[...], preferred_element_type=jnp.float32) + b1b_ref[...], 0.0)
    h = h.reshape(TN, S, F)                                                # (TN, S, F)

    # masked mean / masked (unbiased) std pooling over the pixel axis (axis=1)
    mk = mask_ref[...]                                                     # (TN, S, 1)
    msum = jnp.sum(mk, axis=1)                                             # (TN, 1)
    mean = jnp.sum(h * mk, axis=1) / msum                                  # (TN, F)
    cen = (h - mean[:, None, :]) * mk                                      # (TN, S, F)
    d = jnp.where(msum == 1.0, 2.0, msum)                                  # (TN, 1)
    var = jnp.sum(cen * cen, axis=1) / (d - 1.0)                           # (TN, F)
    std = jnp.sqrt(var + 1e-31)                                            # (TN, F)

    # MLP2: single K=128 matmul on [mean | std]; extra (K=E=4) done on the VPU
    ms_ref[:, 0:F] = mean
    ms_ref[:, F:2 * F] = std
    z = (jnp.dot(ms_ref[...], w2ms_ref[...], preferred_element_type=jnp.float32)
         + b2_ref[...])                                                    # (TN, 128)
    e = extra_ref[...]                                                     # (TN, E)
    for k in range(E):                                                     # VPU broadcast FMA
        z = z + e[:, k:k + 1] * w2e_ref[k:k + 1, :]

    out_ref[...] = jnp.maximum(z, 0.0)                                     # (TN, 128)


def pse_forward(pix_nsc, mask_ns1, extra_ne, pse_params, tile_n=None):
    N, S, C = pix_nsc.shape
    E = extra_ne.shape[-1]
    if tile_n is None:
        tile_n = 8 if N % 8 == 0 else N      # >=2 parallel tiles at N=16 (keeps both v7x TCs busy)
    assert N % tile_n == 0
    w1a, b1a, w1b, b1b, w2ms, w2e, b2 = pse_params
    F = MLP1[-1]

    def full(a):
        nd = a.ndim
        return pl.BlockSpec(a.shape, lambda i, _nd=nd: (0,) * _nd)

    return pl.pallas_call(
        pse_kernel,
        out_shape=jax.ShapeDtypeStruct((N, MLP2_OUT), jnp.float32),
        grid=(N // tile_n,),
        in_specs=[
            pl.BlockSpec((tile_n, S, C), lambda i: (i, 0, 0)),
            pl.BlockSpec((tile_n, S, 1), lambda i: (i, 0, 0)),
            pl.BlockSpec((tile_n, E), lambda i: (i, 0)),
            full(w1a), full(b1a), full(w1b), full(b1b),
            full(w2ms), full(w2e), full(b2),
        ],
        out_specs=pl.BlockSpec((tile_n, MLP2_OUT), lambda i: (i, 0)),
        scratch_shapes=[pltpu.VMEM((tile_n, 2 * F), jnp.float32)],
        compiler_params=pltpu.CompilerParams(
            dimension_semantics=("parallel",),
            vmem_limit_bytes=32 * 1024 * 1024),
    )(pix_nsc, mask_ns1, extra_ne, w1a, b1a, w1b, b1b, w2ms, w2e, b2)


# ---------------------------------------------------------------------------
# Kernel 2: GRU temporal encoder (last hidden state) + decoder MLP
#   x is time-major flattened: row index = t * B + b
# ---------------------------------------------------------------------------
def gru_decoder_kernel(x_ref, wih_ref, whh_ref, bih_ref, bhh_ref,
                       wd1_ref, bd1_ref, wd2_ref, bd2_ref, wd3_ref, bd3_ref,
                       out_ref, gi_ref):
    H = HIDDEN
    B = out_ref.shape[0]
    TB = x_ref.shape[0]
    T = TB // B

    # Hoist the input-to-hidden projection off the serial critical path:
    # one (T*B, 128) x (128, 384) matmul instead of T tiny ones inside the loop.
    gi_ref[...] = (jnp.dot(x_ref[...], wih_ref[...],
                           preferred_element_type=jnp.float32) + bih_ref[...])

    whh = whh_ref[...]
    bhh = bhh_ref[...]
    h = jnp.zeros((B, H), jnp.float32)
    for t in range(T):                       # static unroll (T fixed at trace time)
        gi = gi_ref[pl.ds(t * B, B), :]                                   # (B, 3H)
        gh = jnp.dot(h, whh, preferred_element_type=jnp.float32) + bhh    # (B, 3H)
        r = jax.nn.sigmoid(gi[:, :H] + gh[:, :H])
        z = jax.nn.sigmoid(gi[:, H:2 * H] + gh[:, H:2 * H])
        n = jnp.tanh(gi[:, 2 * H:] + r * gh[:, 2 * H:])
        h = (1.0 - z) * n + z * h

    # decoder: (Linear + folded BN + ReLU) x2, final Linear -> padded 128-lane logits
    d = jnp.maximum(
        jnp.dot(h, wd1_ref[...], preferred_element_type=jnp.float32) + bd1_ref[...], 0.0)
    d = jnp.maximum(
        jnp.dot(d, wd2_ref[...], preferred_element_type=jnp.float32) + bd2_ref[...], 0.0)
    out_ref[...] = jnp.dot(d, wd3_ref[...], preferred_element_type=jnp.float32) + bd3_ref[...]


def gru_decoder_forward(x_flat_tb, batch, gru_params, dec_params_padded):
    TB, _ = x_flat_tb.shape
    vmem = pl.BlockSpec(memory_space=pltpu.MemorySpace.VMEM)
    n_in = 1 + len(gru_params) + len(dec_params_padded)
    return pl.pallas_call(
        gru_decoder_kernel,
        out_shape=jax.ShapeDtypeStruct((batch, PAD_CLASSES), jnp.float32),
        in_specs=[vmem] * n_in,
        out_specs=vmem,
        scratch_shapes=[pltpu.VMEM((TB, 3 * HIDDEN), jnp.float32)],
        compiler_params=pltpu.CompilerParams(vmem_limit_bytes=32 * 1024 * 1024),
    )(x_flat_tb, *gru_params, *dec_params_padded)


# ---------------------------------------------------------------------------
# Deterministic parameter init (PyTorch-style uniform(-1/sqrt(fan_in), ...))
# ---------------------------------------------------------------------------
def linear_init(key, fan_in, fan_out):
    kw, kb = jax.random.split(key)
    bound = 1.0 / np.sqrt(fan_in)
    w = jax.random.uniform(kw, (fan_in, fan_out), jnp.float32, -bound, bound)
    b = jax.random.uniform(kb, (1, fan_out), jnp.float32, -bound, bound)
    return w, b


def init_all_params(key):
    ks = jax.random.split(key, 7)
    w1a, b1a = linear_init(ks[0], MLP1[0], MLP1[1])
    w1b, b1b = linear_init(ks[1], MLP1[1], MLP1[2])
    w2, b2 = linear_init(ks[2], MLP2_IN, MLP2_OUT)
    F = MLP1[2]
    # fused [mean|std] weight (128,128) + separate extra weight (4,128)
    pse_params = (w1a, b1a, w1b, b1b, w2[:2 * F], w2[2 * F:], b2)

    hb = 1.0 / np.sqrt(HIDDEN)
    kih, khh, kbi, kbh = jax.random.split(ks[3], 4)
    wih = jax.random.uniform(kih, (MLP2_OUT, 3 * HIDDEN), jnp.float32, -hb, hb)
    whh = jax.random.uniform(khh, (HIDDEN, 3 * HIDDEN), jnp.float32, -hb, hb)
    bih = jax.random.uniform(kbi, (1, 3 * HIDDEN), jnp.float32, -hb, hb)
    bhh = jax.random.uniform(kbh, (1, 3 * HIDDEN), jnp.float32, -hb, hb)
    gru_params = (wih, whh, bih, bhh)

    wd1, bd1 = linear_init(ks[4], MLP4[0], MLP4[1])
    wd2, bd2 = linear_init(ks[5], MLP4[1], MLP4[2])
    wd3, bd3 = linear_init(ks[6], MLP4[2], NUM_CLASSES)
    dec_params = (wd1, bd1, wd2, bd2, wd3, bd3)
    # zero-pad the final projection so the kernel's logits store is lane-dense (128 wide)
    wd3p = jnp.zeros((MLP4[2], PAD_CLASSES), jnp.float32).at[:, :NUM_CLASSES].set(wd3)
    bd3p = jnp.zeros((1, PAD_CLASSES), jnp.float32).at[:, :NUM_CLASSES].set(bd3)
    dec_params_padded = (wd1, bd1, wd2, bd2, wd3p, bd3p)
    return pse_params, gru_params, dec_params, dec_params_padded


# ---------------------------------------------------------------------------
# Pure-JAX reference (same folded parameters) for correctness checking
# ---------------------------------------------------------------------------
def ref_pse(pix_nsc, mask_ns1, extra_ne, pse_params):
    w1a, b1a, w1b, b1b, w2ms, w2e, b2 = pse_params
    h = jnp.maximum(pix_nsc @ w1a + b1a, 0.0)
    h = jnp.maximum(h @ w1b + b1b, 0.0)
    mk = mask_ns1
    msum = jnp.sum(mk, axis=1)
    mean = jnp.sum(h * mk, axis=1) / msum
    cen = (h - mean[:, None, :]) * mk
    d = jnp.where(msum == 1.0, 2.0, msum)
    var = jnp.sum(cen * cen, axis=1) / (d - 1.0)
    std = jnp.sqrt(var + 1e-31)
    feat = jnp.concatenate([mean, std], axis=-1) @ w2ms + extra_ne @ w2e + b2
    return jnp.maximum(feat, 0.0)


def ref_gru_decoder(x_tbd, gru_params, dec_params):
    wih, whh, bih, bhh = gru_params
    wd1, bd1, wd2, bd2, wd3, bd3 = dec_params
    B = x_tbd.shape[1]
    H = HIDDEN

    def step(h, xt):
        gi = xt @ wih + bih
        gh = h @ whh + bhh
        r = jax.nn.sigmoid(gi[:, :H] + gh[:, :H])
        z = jax.nn.sigmoid(gi[:, H:2 * H] + gh[:, H:2 * H])
        n = jnp.tanh(gi[:, 2 * H:] + r * gh[:, 2 * H:])
        return (1.0 - z) * n + z * h, None

    h, _ = lax.scan(step, jnp.zeros((B, H), jnp.float32), x_tbd)
    d = jnp.maximum(h @ wd1 + bd1, 0.0)
    d = jnp.maximum(d @ wd2 + bd2, 0.0)
    return d @ wd3 + bd3


# ---------------------------------------------------------------------------
if __name__ == "__main__":
    B, T, C, S, E = 2, 8, INPUT_DIM, 16, EXTRA
    key = jax.random.PRNGKey(0)
    k_pix, k_mask, k_extra, k_par = jax.random.split(key, 4)

    # PyTorch-layout inputs
    pixels = jax.random.normal(k_pix, (B, T, C, S), jnp.float32)     # B x T x C x S
    mask = (jax.random.uniform(k_mask, (B, T, S)) > 0.3).astype(jnp.float32)
    mask = mask.at[..., 0].set(1.0)       # ensure >=1 valid pixel per (b, t)
    extra = jax.random.normal(k_extra, (B, T, E), jnp.float32)
    positions = jnp.tile(jnp.arange(T, dtype=jnp.int32)[None], (B, 1))
    # TODO(synk): `positions` / max_position / max_temporal_shift only feed the
    # positional-encoding-based temporal encoders; the GRU baseline ignores them.
    del positions

    pse_params, gru_params, dec_params, dec_params_padded = init_all_params(k_par)

    # glue: PyTorch layout -> time-major feature-last layout (row = t*B + b) so the
    # PSE output feeds the GRU kernel directly (no transpose / extra HBM roundtrip)
    N = T * B
    pix_nsc = jnp.transpose(pixels, (1, 0, 3, 2)).reshape(N, S, C)
    mask_ns1 = jnp.transpose(mask, (1, 0, 2)).reshape(N, S, 1)
    extra_ne = jnp.transpose(extra, (1, 0, 2)).reshape(N, E)

    # spatial encoder (batched, 2 parallel tiles of 8 samples)
    feats = pse_forward(pix_nsc, mask_ns1, extra_ne, pse_params)          # (T*B, 128)
    # temporal encoder + decoder (single VMEM-resident kernel)
    logits_padded = gru_decoder_forward(feats, B, gru_params, dec_params_padded)
    logits = logits_padded[:, :NUM_CLASSES]                               # (B, 20)
    logits = jax.block_until_ready(logits)

    # reference check
    ref_feats = ref_pse(pix_nsc, mask_ns1, extra_ne, pse_params)          # (T*B, 128)
    ref_logits = ref_gru_decoder(ref_feats.reshape(T, B, MLP2_OUT),
                                 gru_params, dec_params)
    assert logits.shape == (B, NUM_CLASSES)
    assert np.all(np.isfinite(np.asarray(logits)))
    assert np.allclose(np.asarray(logits), np.asarray(ref_logits), atol=5e-2, rtol=5e-2)

    print("KERNEL_OK")
</pallas_src>

<mosaic_0001>
module attributes {stable_mosaic.version = 11 : i64} {
  func.func @pse_kernel(%arg0: i32, %arg1: memref<8x16x10xf32, #tpu.memory_space<vmem>>, %arg2: memref<8x16x1xf32, #tpu.memory_space<vmem>>, %arg3: memref<8x4xf32, #tpu.memory_space<vmem>>, %arg4: memref<10x32xf32, #tpu.memory_space<vmem>>, %arg5: memref<1x32xf32, #tpu.memory_space<vmem>>, %arg6: memref<32x64xf32, #tpu.memory_space<vmem>>, %arg7: memref<1x64xf32, #tpu.memory_space<vmem>>, %arg8: memref<128x128xf32, #tpu.memory_space<vmem>>, %arg9: memref<4x128xf32, #tpu.memory_space<vmem>>, %arg10: memref<1x128xf32, #tpu.memory_space<vmem>>, %arg11: memref<8x128xf32, #tpu.memory_space<vmem>>, %arg12: memref<8x128xf32, #tpu.memory_space<vmem>>) attributes {dimension_semantics = [#tpu.dimension_semantics<parallel>], iteration_bounds = array<i64: 2>, scalar_prefetch = 0 : i64, scratch_operands = 1 : i64, tpu.core_type = #tpu.core_type<tc>, window_params = [{transform_indices = @transform_0, window_bounds = array<i64: 8, 16, 10>}, {transform_indices = @transform_1, window_bounds = array<i64: 8, 16, 1>}, {transform_indices = @transform_2, window_bounds = array<i64: 8, 4>}, {pipeline_mode = #tpu.pipeline_mode<synchronous>, transform_indices = @transform_3, window_bounds = array<i64: 10, 32>}, {pipeline_mode = #tpu.pipeline_mode<synchronous>, transform_indices = @transform_4, window_bounds = array<i64: 1, 32>}, {pipeline_mode = #tpu.pipeline_mode<synchronous>, transform_indices = @transform_5, window_bounds = array<i64: 32, 64>}, {pipeline_mode = #tpu.pipeline_mode<synchronous>, transform_indices = @transform_6, window_bounds = array<i64: 1, 64>}, {pipeline_mode = #tpu.pipeline_mode<synchronous>, transform_indices = @transform_7, window_bounds = array<i64: 128, 128>}, {pipeline_mode = #tpu.pipeline_mode<synchronous>, transform_indices = @transform_8, window_bounds = array<i64: 4, 128>}, {pipeline_mode = #tpu.pipeline_mode<synchronous>, transform_indices = @transform_9, window_bounds = array<i64: 1, 128>}, {transform_indices = @transform_10, window_bounds = array<i64: 8, 128>}]} {
    %c0 = arith.constant 0 : index
    %c0_0 = arith.constant 0 : index
    %c0_1 = arith.constant 0 : index
    %0 = vector.load %arg1[%c0, %c0_0, %c0_1] : memref<8x16x10xf32, #tpu.memory_space<vmem>>, vector<8x16x10xf32>
    %1 = vector.shape_cast %0 : vector<8x16x10xf32> to vector<128x10xf32>
    %c0_2 = arith.constant 0 : index
    %c0_3 = arith.constant 0 : index
    %2 = vector.load %arg4[%c0_2, %c0_3] : memref<10x32xf32, #tpu.memory_space<vmem>>, vector<10x32xf32>
    %cst = arith.constant dense<0.000000e+00> : vector<128x32xf32>
    %3 = tpu.matmul %1, %2, %cst {dimension_numbers = #tpu.dot_dimension_numbers<[1], [0], [0], [1], [0, 0, 1, 1], [], []>} : vector<128x10xf32>, vector<10x32xf32>, vector<128x32xf32> -> vector<128x32xf32>
    %c0_4 = arith.constant 0 : index
    %c0_5 = arith.constant 0 : index
    %4 = vector.load %arg5[%c0_4, %c0_5] : memref<1x32xf32, #tpu.memory_space<vmem>>, vector<1x32xf32>
    %5 = vector.broadcast %4 : vector<1x32xf32> to vector<128x32xf32>
    %6 = arith.addf %3, %5 : vector<128x32xf32>
    %cst_6 = arith.constant 0.000000e+00 : f32
    %7 = vector.broadcast %cst_6 : f32 to vector<128x32xf32>
    %8 = arith.maximumf %6, %7 : vector<128x32xf32>
    %c0_7 = arith.constant 0 : index
    %c0_8 = arith.constant 0 : index
    %9 = vector.load %arg6[%c0_7, %c0_8] : memref<32x64xf32, #tpu.memory_space<vmem>>, vector<32x64xf32>
    %cst_9 = arith.constant dense<0.000000e+00> : vector<128x64xf32>
    %10 = tpu.matmul %8, %9, %cst_9 {dimension_numbers = #tpu.dot_dimension_numbers<[1], [0], [0], [1], [0, 0, 1, 1], [], []>} : vector<128x32xf32>, vector<32x64xf32>, vector<128x64xf32> -> vector<128x64xf32>
    %c0_10 = arith.constant 0 : index
    %c0_11 = arith.constant 0 : index
    %11 = vector.load %arg7[%c0_10, %c0_11] : memref<1x64xf32, #tpu.memory_space<vmem>>, vector<1x64xf32>
    %12 = vector.broadcast %11 : vector<1x64xf32> to vector<128x64xf32>
    %13 = arith.addf %10, %12 : vector<128x64xf32>
    %cst_12 = arith.constant 0.000000e+00 : f32
    %14 = vector.broadcast %cst_12 : f32 to vector<128x64xf32>
    %15 = arith.maximumf %13, %14 : vector<128x64xf32>
    %16 = vector.shape_cast %15 : vector<128x64xf32> to vector<8x16x64xf32>
    %c0_13 = arith.constant 0 : index
    %c0_14 = arith.constant 0 : index
    %c0_15 = arith.constant 0 : index
    %17 = vector.load %arg2[%c0_13, %c0_14, %c0_15] : memref<8x16x1xf32, #tpu.memory_space<vmem>>, vector<8x16x1xf32>
    %cst_16 = arith.constant dense<0.000000e+00> : vector<8x1xf32>
    %18 = vector.multi_reduction <add>, %17, %cst_16 [1] : vector<8x16x1xf32> to vector<8x1xf32>
    %19 = vector.broadcast %17 : vector<8x16x1xf32> to vector<8x16x64xf32>
    %20 = arith.mulf %16, %19 : vector<8x16x64xf32>
    %cst_17 = arith.constant dense<0.000000e+00> : vector<8x64xf32>
    %21 = vector.multi_reduction <add>, %20, %cst_17 [1] : vector<8x16x64xf32> to vector<8x64xf32>
    %22 = vector.broadcast %18 : vector<8x1xf32> to vector<8x64xf32>
    %23 = arith.divf %21, %22 : vector<8x64xf32>
    %24 = vector.shape_cast %23 : vector<8x64xf32> to vector<8x1x64xf32>
    %25 = vector.broadcast %24 : vector<8x1x64xf32> to vector<8x16x64xf32>
    %26 = arith.subf %16, %25 : vector<8x16x64xf32>
    %27 = vector.broadcast %17 : vector<8x16x1xf32> to vector<8x16x64xf32>
    %28 = arith.mulf %26, %27 : vector<8x16x64xf32>
    %cst_18 = arith.constant 1.000000e+00 : f32
    %29 = vector.broadcast %cst_18 : f32 to vector<8x1xf32>
    %30 = arith.cmpf oeq, %18, %29 : vector<8x1xf32>
    %cst_19 = arith.constant 2.000000e+00 : f32
    %31 = vector.broadcast %cst_19 : f32 to vector<8x1xf32>
    %32 = arith.select %30, %31, %18 : vector<8x1xi1>, vector<8x1xf32>
    %33 = arith.mulf %28, %28 : vector<8x16x64xf32>
    %cst_20 = arith.constant dense<0.000000e+00> : vector<8x64xf32>
    %34 = vector.multi_reduction <add>, %33, %cst_20 [1] : vector<8x16x64xf32> to vector<8x64xf32>
    %cst_21 = arith.constant 1.000000e+00 : f32
    %35 = vector.broadcast %cst_21 : f32 to vector<8x1xf32>
    %36 = arith.subf %32, %35 : vector<8x1xf32>
    %37 = vector.broadcast %36 : vector<8x1xf32> to vector<8x64xf32>
    %38 = arith.divf %34, %37 : vector<8x64xf32>
    %cst_22 = arith.constant 9.99999979E-32 : f32
    %39 = vector.broadcast %cst_22 : f32 to vector<8x64xf32>
    %40 = arith.addf %38, %39 : vector<8x64xf32>
    %41 = math.sqrt %40 : vector<8x64xf32>
    %c0_23 = arith.constant 0 : index
    %c0_24 = arith.constant 0 : index
    %42 = vector.load %arg12[%c0_23, %c0_24] : memref<8x128xf32, #tpu.memory_space<vmem>>, vector<8x64xf32>
    tpu.vector_store %arg12[%c0_23, %c0_24], %23 {strides = array<i32>} : memref<8x128xf32, #tpu.memory_space<vmem>>, vector<8x64xf32>,
    %c0_25 = arith.constant 0 : index
    %c64 = arith.constant 64 : index
    %43 = vector.load %arg12[%c0_25, %c64] : memref<8x128xf32, #tpu.memory_space<vmem>>, vector<8x64xf32>
    tpu.vector_store %arg12[%c0_25, %c64], %41 {strides = array<i32>} : memref<8x128xf32, #tpu.memory_space<vmem>>, vector<8x64xf32>,
    %c0_26 = arith.constant 0 : index
    %c0_27 = arith.constant 0 : index
    %44 = vector.load %arg12[%c0_26, %c0_27] : memref<8x128xf32, #tpu.memory_space<vmem>>, vector<8x128xf32>
    %c0_28 = arith.constant 0 : index
    %c0_29 = arith.constant 0 : index
    %45 = vector.load %arg8[%c0_28, %c0_29] : memref<128x128xf32, #tpu.memory_space<vmem>>, vector<128x128xf32>
    %cst_30 = arith.constant dense<0.000000e+00> : vector<8x128xf32>
    %46 = tpu.matmul %44, %45, %cst_30 {dimension_numbers = #tpu.dot_dimension_numbers<[1], [0], [0], [1], [0, 0, 1, 1], [], []>} : vector<8x128xf32>, vector<128x128xf32>, vector<8x128xf32> -> vector<8x128xf32>
    %c0_31 = arith.constant 0 : index
    %c0_32 = arith.constant 0 : index
    %47 = vector.load %arg10[%c0_31, %c0_32] : memref<1x128xf32, #tpu.memory_space<vmem>>, vector<1x128xf32>
    %48 = vector.broadcast %47 : vector<1x128xf32> to vector<8x128xf32>
    %49 = arith.addf %46, %48 : vector<8x128xf32>
    %c0_33 = arith.constant 0 : index
    %c0_34 = arith.constant 0 : index
    %50 = vector.load %arg3[%c0_33, %c0_34] : memref<8x4xf32, #tpu.memory_space<vmem>>, vector<8x4xf32>
    %51 = vector.extract_strided_slice %50 {offsets = [0, 0], sizes = [8, 1], strides = [1, 1]} : vector<8x4xf32> to vector<8x1xf32>
    %c0_35 = arith.constant 0 : index
    %c0_36 = arith.constant 0 : index
    %52 = vector.load %arg9[%c0_35, %c0_36] : memref<4x128xf32, #tpu.memory_space<vmem>>, vector<1x128xf32>
    %53 = vector.broadcast %51 : vector<8x1xf32> to vector<8x128xf32>
    %54 = vector.broadcast %52 : vector<1x128xf32> to vector<8x128xf32>
    %55 = arith.mulf %53, %54 : vector<8x128xf32>
    %56 = arith.addf %49, %55 : vector<8x128xf32>
    %57 = vector.extract_strided_slice %50 {offsets = [0, 1], sizes = [8, 1], strides = [1, 1]} : vector<8x4xf32> to vector<8x1xf32>
    %c1 = arith.constant 1 : index
    %c0_37 = arith.constant 0 : index
    %58 = vector.load %arg9[%c1, %c0_37] : memref<4x128xf32, #tpu.memory_space<vmem>>, vector<1x128xf32>
    %59 = vector.broadcast %57 : vector<8x1xf32> to vector<8x128xf32>
    %60 = vector.broadcast %58 : vector<1x128xf32> to vector<8x128xf32>
    %61 = arith.mulf %59, %60 : vector<8x128xf32>
    %62 = arith.addf %56, %61 : vector<8x128xf32>
    %63 = vector.extract_strided_slice %50 {offsets = [0, 2], sizes = [8, 1], strides = [1, 1]} : vector<8x4xf32> to vector<8x1xf32>
    %c2 = arith.constant 2 : index
    %c0_38 = arith.constant 0 : index
    %64 = vector.load %arg9[%c2, %c0_38] : memref<4x128xf32, #tpu.memory_space<vmem>>, vector<1x128xf32>
    %65 = vector.broadcast %63 : vector<8x1xf32> to vector<8x128xf32>
    %66 = vector.broadcast %64 : vector<1x128xf32> to vector<8x128xf32>
    %67 = arith.mulf %65, %66 : vector<8x128xf32>
    %68 = arith.addf %62, %67 : vector<8x128xf32>
    %69 = vector.extract_strided_slice %50 {offsets = [0, 3], sizes = [8, 1], strides = [1, 1]} : vector<8x4xf32> to vector<8x1xf32>
    %c3 = arith.constant 3 : index
    %c0_39 = arith.constant 0 : index
    %70 = vector.load %arg9[%c3, %c0_39] : memref<4x128xf32, #tpu.memory_space<vmem>>, vector<1x128xf32>
    %71 = vector.broadcast %69 : vector<8x1xf32> to vector<8x128xf32>
    %72 = vector.broadcast %70 : vector<1x128xf32> to vector<8x128xf32>
    %73 = arith.mulf %71, %72 : vector<8x128xf32>
    %74 = arith.addf %68, %73 : vector<8x128xf32>
    %cst_40 = arith.constant 0.000000e+00 : f32
    %75 = vector.broadcast %cst_40 : f32 to vector<8x128xf32>
    %76 = arith.maximumf %74, %75 : vector<8x128xf32>
    %c0_41 = arith.constant 0 : index
    %c0_42 = arith.constant 0 : index
    %77 = vector.load %arg11[%c0_41, %c0_42] : memref<8x128xf32, #tpu.memory_space<vmem>>, vector<8x128xf32>
    tpu.vector_store %arg11[%c0_41, %c0_42], %76 {strides = array<i32>} : memref<8x128xf32, #tpu.memory_space<vmem>>, vector<8x128xf32>,
    return
  }
  func.func @transform_0(%arg0: i32) -> (i32, i32, i32) {
    %c0_i32 = arith.constant 0 : i32
    %c0_i32_0 = arith.constant 0 : i32
    %c0_i32_1 = arith.constant 0 : i32
    return %arg0, %c0_i32, %c0_i32_0 : i32, i32, i32
  }
  func.func @transform_1(%arg0: i32) -> (i32, i32, i32) {
    %c0_i32 = arith.constant 0 : i32
    %c0_i32_0 = arith.constant 0 : i32
    %c0_i32_1 = arith.constant 0 : i32
    return %arg0, %c0_i32, %c0_i32_0 : i32, i32, i32
  }
  func.func @transform_2(%arg0: i32) -> (i32, i32) {
    %c0_i32 = arith.constant 0 : i32
    %c0_i32_0 = arith.constant 0 : i32
    return %arg0, %c0_i32 : i32, i32
  }
  func.func @transform_3(%arg0: i32) -> (i32, i32) {
    %c0_i32 = arith.constant 0 : i32
    %c0_i32_0 = arith.constant 0 : i32
    %c0_i32_1 = arith.constant 0 : i32
    return %c0_i32, %c0_i32_0 : i32, i32
  }
  func.func @transform_4(%arg0: i32) -> (i32, i32) {
    %c0_i32 = arith.constant 0 : i32
    %c0_i32_0 = arith.constant 0 : i32
    %c0_i32_1 = arith.constant 0 : i32
    return %c0_i32, %c0_i32_0 : i32, i32
  }
  func.func @transform_5(%arg0: i32) -> (i32, i32) {
    %c0_i32 = arith.constant 0 : i32
    %c0_i32_0 = arith.constant 0 : i32
    %c0_i32_1 = arith.constant 0 : i32
    return %c0_i32, %c0_i32_0 : i32, i32
  }
  func.func @transform_6(%arg0: i32) -> (i32, i32) {
    %c0_i32 = arith.constant 0 : i32
    %c0_i32_0 = arith.constant 0 : i32
    %c0_i32_1 = arith.constant 0 : i32
    return %c0_i32, %c0_i32_0 : i32, i32
  }
  func.func @transform_7(%arg0: i32) -> (i32, i32) {
    %c0_i32 = arith.constant 0 : i32
    %c0_i32_0 = arith.constant 0 : i32
    %c0_i32_1 = arith.constant 0 : i32
    return %c0_i32, %c0_i32_0 : i32, i32
  }
  func.func @transform_8(%arg0: i32) -> (i32, i32) {
    %c0_i32 = arith.constant 0 : i32
    %c0_i32_0 = arith.constant 0 : i32
    %c0_i32_1 = arith.constant 0 : i32
    return %c0_i32, %c0_i32_0 : i32, i32
  }
  func.func @transform_9(%arg0: i32) -> (i32, i32) {
    %c0_i32 = arith.constant 0 : i32
    %c0_i32_0 = arith.constant 0 : i32
    %c0_i32_1 = arith.constant 0 : i32
    return %c0_i32, %c0_i32_0 : i32, i32
  }
  func.func @transform_10(%arg0: i32) -> (i32, i32) {
    %c0_i32 = arith.constant 0 : i32
    %c0_i32_0 = arith.constant 0 : i32
    return %arg0, %c0_i32 : i32, i32
  }
}

</mosaic_0001>

<bundles_post_ra>
// kernel: tpu_custom_call.1
= control target key start
LH: loop header
LB: loop body
LE: loop exit
PB: predicated region body
PF: predicated region fallthrough
CT: control target
= control target key end

     0   :  { %s2813_s0 = inlined_call_operand.vmem [shape: f32[16,16,10], index: 0, kind: input, shape index: {}]   ;;  %s2814_s1 = inlined_call_operand.vmem [shape: f32[16,16,1], index: 1, kind: input, shape index: {}]   ;;  %s2815_s2 = inlined_call_operand.vmem [shape: f32[16,4], index: 2, kind: input, shape index: {}]   ;;  %s2816_s3 = inlined_call_operand.vmem [shape: f32[10,32], index: 3, kind: input, shape index: {}]   ;;  %s2817_s4 = inlined_call_operand.vmem [shape: f32[1,32], index: 4, kind: input, shape index: {}]   ;;  %s2818_s5 = inlined_call_operand.vmem [shape: f32[32,64], index: 5, kind: input, shape index: {}]   ;;  %s2819_s6 = inlined_call_operand.vmem [shape: f32[1,64], index: 6, kind: input, shape index: {}]   ;;  %s2820_s7 = inlined_call_operand.vmem [shape: f32[128,128], index: 7, kind: input, shape index: {}]   ;;  %s2821_s8 = inlined_call_operand.vmem [shape: f32[4,128], index: 8, kind: input, shape index: {}]   ;;  %s2822_s9 = inlined_call_operand.vmem [shape: f32[1,128], index: 9, kind: input, shape index: {}]   ;;  %s2823_s10 = inlined_call_operand.hbm [shape: f32[16,128], index: 10, kind: output, shape index: {}]  }
   0x1   :  { %2824 = sst [smem:[#allocation6_spill]] %s2813_s0 }
   0x2   :  { %15 = vsyncpa [#allocation4], 0 }
   0x3   :  { %17 = vsyncpa [#allocation4 + $0x1], 0  ;;  %s2168_s13 = smov 0   ;;  %s2170_s14 = smov 0  }
   0x4   :  { %s2172_s15 = smov 0   ;;  %s2174_s16 = smov 0  }
   0x5 LB: > { %s2189_s17 = sadd.s32 4294967295, %s2103_s16   ;;  %s1726_s18 = sadd.s32 4294967294, %s2103_s16   ;;  %s2103_s16 = sphi %s2174_s16, %s2831_s16   ;;  %s2099_s15 = sphi %s2172_s15, %s2830_s15   ;;  %s2095_s14 = sphi %s2170_s14, %s2829_s14   ;;  %s2091_s13 = sphi %s2168_s13, %s2828_s13  }
   0x6   : > { %s2193_s19 = sadd.s32 1, %s2103_s16   ;;  %s255_s20 = sadd.s32 1, %s2099_s15 }
   0x7   : > { %s252_s21 = ssub.s32 %s2103_s16, %s2193_s19  ;;  %p265_p0 = scmp.ne.s32.totalorder %s2099_s15, %s2095_s14 }
   0x8   : > { %p253_p1 = scmp.eq.s32.totalorder %s252_s21, 0  ;;  %p266_p2 = scmp.eq.s32.totalorder %s2189_s17, 1 }
   0x9   : > { %p271_p3 = scmp.ne.s32.totalorder %s2095_s14, %s2091_s13  ;;  %p272_p4 = scmp.eq.s32.totalorder %s1726_s18, 1 }
   0xa   : > { %s2204_s22 = scalar_select %p253_p1, %s2099_s15, %s255_s20  }
   0xb   : > { %p2206_p5 = por %p266_p2, %p265_p0  ;;  %p2210_p6 = por %p272_p4, %p271_p3 }
   0xc   : > { %p1729_p7 = scmp.ge.s32.totalorder %s2103_s16, 1  ;;  %p338_p8 = scmp.lt.s32.totalorder %s2103_s16, 3 }
   0xe   : > { %p339_p9 = pnand %p1729_p7, %p338_p8 }
   0xf   : > { %s1731_s29 = sshll.u32 (!%p339_p9), %s2189_s17, 3  ;;  %s2827_s0 = sld [smem:[#allocation6_spill]] (!%p339_p9) }
  0x10   : > { %342 = sbr.rel (%p339_p9) target bundleno = 876 (0x36c), region = 60  ;;  %p388_p10 = scmp.lt.s32.totalorder (!%p339_p9), %s1731_s29, 15 }
  0x11   : > { %p401_p11 = scmp.lt.s32.totalorder (!%p339_p9), %s2189_s17, 1  ;;  %s384_s12 = sand.u32 (!%p339_p9), 1, %s2095_s14  }
  0x12   : > { %s1630_s20 = scalar_lea.sflag (!%p339_p9), [#allocation4], %s384_s12 }
  0x15   : > { %v422_v0 = vld [vmem:[%s2816_s3 + $0x8] sm:$0x3]  ;;  %vm479_vm0 = vcmask 1041408   ;;  %v421_v1 = vld [vmem:[%s2816_s3] sm:$0xff]  ;;  %s2833_s29 = smov (!%p388_p10, %s1731_s29), 15  ;;  %vm430_vm1 = vcmask 80896  }
  0x16   : > { %1847 = vmatprep.subr.msk.mxu0 %vm479_vm0, %v422_v0  ;;  %s1790_s30 = sshll.u32 %s2833_s29, 4  ;;  %v647_v18 = vld [vmem:[%s2818_s5 + $0x18] sm:$0xff]  ;;  %v646_v19 = vld [vmem:[%s2818_s5 + $0x10] sm:$0xff]  ;;  %v645_v20 = vld [vmem:[%s2818_s5 + $0x8] sm:$0xff]  ;;  %v2105_v21 = vmov 0   ;;  %vm881_vm2 = vcmask 7168  }
  0x17   : > { %1848 = vmatpush3.msk.msra.mxu0 %vm479_vm0, %v422_v0  ;;  %s2231_s18 = scalar_lea.vmem %s2827_s0, %s1790_s30  ;;  %1875 = vmatprep.subr.mxu1 %v647_v18  ;;  %v644_v22 = vld [vmem:[%s2818_s5] sm:$0xff]  ;;  %vm655_vm11 = vcmask 261120   ;;  %vm1050_vm12 = vcmask 523264   ;;  %vm1451_vm13 = vcmask 1041409   ;;  %vm1453_vm14 = vcmask 1042434  }
  0x18   : > { %1849 = vmatprep.subr.mxu0 %v421_v1  ;;  %v405_v2 = vld [vmem:[%s2231_s18] sm:$0xff]  ;;  %v406_v3 = vld [vmem:[%s2231_s18 + $0x8] sm:$0xff]  ;;  %v407_v4 = vld [vmem:[%s2231_s18 + $0x10] sm:$0xff]  ;;  %1876 = vmatpush3.msra.mxu1 %v647_v18  ;;  %s402_s29 = scalar_select %p401_p11, %s2189_s17, 1  ;;  %vm1455_vm15 = vcmask 1043459   ;;  %vm1457_vm0 = vcmask 1044484  }
  0x19   : > { %1850 = vmatpush3.msra.mxu0 %v421_v1  ;;  %1851 = vmatprep.mubr.msk.f32.mxu0 %vm430_vm1, %v405_v2  ;;  %v408_v5 = vld [vmem:[%s2231_s18 + $0x18] sm:$0xff]  ;;  %v409_v6 = vld [vmem:[%s2231_s18 + $0x20] sm:$0xff]  ;;  %v410_v7 = vld [vmem:[%s2231_s18 + $0x28] sm:$0xff] }
  0x1a   : > { %1852 = vmatmul.mubr.msk.f32.vlgmr.msra.gmra.mxu0 %vm430_vm1, %v406_v3  ;;  %v411_v8 = vld [vmem:[%s2231_s18 + $0x30] sm:$0xff]  ;;  %v412_v9 = vld [vmem:[%s2231_s18 + $0x38] sm:$0xff]  ;;  %v413_v10 = vld [vmem:[%s2231_s18 + $0x40] sm:$0xff]  ;;  %1877 = vmatprep.subr.mxu1 %v646_v19 }
  0x1b   : > { %1854 = vmatprep.mubr.msk.f32.mxu0 %vm430_vm1, %v407_v4  ;;  %v414_v11 = vld [vmem:[%s2231_s18 + $0x48] sm:$0xff]  ;;  %v415_v12 = vld [vmem:[%s2231_s18 + $0x50] sm:$0xff]  ;;  %v416_v13 = vld [vmem:[%s2231_s18 + $0x58] sm:$0xff]  ;;  %1878 = vmatpush3.msra.mxu1 %v646_v19 }
  0x1c   : > { %v417_v14 = vld [vmem:[%s2231_s18 + $0x60] sm:$0xff]  ;;  %v418_v15 = vld [vmem:[%s2231_s18 + $0x68] sm:$0xff]  ;;  %v419_v16 = vld [vmem:[%s2231_s18 + $0x70] sm:$0xff]  ;;  %1879 = vmatprep.subr.mxu1 %v645_v20  ;;  %1989 = vset.pattern.permute.xlu1 %v2105_v21 }
  0x1d   : > { %v420_v17 = vld [vmem:[%s2231_s18 + $0x78] sm:$0xff]  ;;  %s2279_s18 = scalar_lea.vmem %s2814_s1, %s1790_s30  ;;  %1880 = vmatpush3.msra.mxu1 %v645_v20  ;;  %1988 = vset.pattern.permute.xlu0 %v2105_v21  ;;  %s1737_s30 = sshll.u32 %s402_s29, 3 }
  0x1e   : > { %1855 = vmatmul.mubr.msk.f32.gmra.mxu0 %vm430_vm1, %v408_v5  ;;  %v867_v23 = vld [vmem:[%s2279_s18 + $0x10] sm:$0xff]  ;;  %1881 = vmatprep.subr.mxu1 %v644_v22  ;;  %v865_v24 = vld [vmem:[%s2279_s18] sm:$0xff]  ;;  %v868_v26 = vld [vmem:[%s2279_s18 + $0x18] sm:$0xff]  ;;  %s2331_s27 = scalar_lea.vmem %s2815_s2, %s1737_s30  ;;  %s2110_s29 = smov 64  }
  0x1f   : > { %1857 = vmatprep.mubr.msk.f32.mxu0 %vm430_vm1, %v409_v6  ;;  %966 = vperm.xlu1 %1989, %v867_v23   ;;  %v891_v25 = vsel %vm881_vm2, %v867_v23, 0.0  ;;  %v892_v27 = vsel %vm881_vm2, %v868_v26, 0.0  ;;  %v882_v28 = vsel %vm881_vm2, %v865_v24, 0.0  ;;  %v866_v30 = vld [vmem:[%s2279_s18 + $0x8] sm:$0xff]  ;;  %v869_v36 = vld [vmem:[%s2279_s18 + $0x20] sm:$0xff]  ;;  %v872_v39 = vld [vmem:[%s2279_s18 + $0x38] sm:$0xff] }
  0x20   : > { %1882 = vmatpush3.msra.mxu1 %v644_v22  ;;  %956 = vperm.xlu0 %1988, %v865_v24   ;;  %v893_v29 = vadd.f32 %v892_v27, %v891_v25  ;;  %v870_v31 = vld [vmem:[%s2279_s18 + $0x28] sm:$0xff]  ;;  %v883_v33 = vsel %vm881_vm2, %v866_v30, 0.0  ;;  %v900_v42 = vsel %vm881_vm2, %v869_v36, 0.0  ;;  %v871_v44 = vld [vmem:[%s2279_s18 + $0x30] sm:$0xff]  ;;  %v910_v47 = vsel %vm881_vm2, %v872_v39, 0.0  ;;  %v873_v55 = vld [vmem:[%s2279_s18 + $0x40] sm:$0xff] }
  0x21   : > { %v884_v34 = vadd.f32 %v883_v33, %v882_v28  ;;  %v901_v38 = vsel %vm881_vm2, %v870_v31, 0.0  ;;  %v874_v48 = vld [vmem:[%s2279_s18 + $0x48] sm:$0xff]  ;;  %v909_v51 = vsel %vm881_vm2, %v871_v44, 0.0  ;;  %v918_v61 = vsel %vm881_vm2, %v873_v55, 0.0  ;;  %v876_v1 = vld [vmem:[%s2279_s18 + $0x58] sm:$0xff]  ;;  %v875_v4 = vld [vmem:[%s2279_s18 + $0x50] sm:$0xff] }
  0x22   : > { %1858 = vmatmul.mubr.msk.f32.gmra.mxu0 %vm430_vm1, %v410_v7  ;;  %v894_v32 = vrot.slane %v893_v29, 4  ;;  %v902_v43 = vadd.f32 %v901_v38, %v900_v42  ;;  %v911_v54 = vadd.f32 %v910_v47, %v909_v51  ;;  %v919_v57 = vsel %vm881_vm2, %v874_v48, 0.0  ;;  %v878_v24 = vld [vmem:[%s2279_s18 + $0x68] sm:$0xff]  ;;  %s1787_s30 = sshll.u32 %s2189_s17, 7 }
  0x23   : > { %1860 = vmatprep.mubr.msk.f32.mxu0 %vm430_vm1, %v411_v8  ;;  %971 = vperm.xlu1 %1989, %v868_v26   ;;  %v885_v37 = vrot.slane %v884_v34, 4  ;;  %v920_v0 = vadd.f32 %v919_v57, %v918_v61  ;;  %v928_v5 = vsel %vm881_vm2, %v876_v1, 0.0  ;;  %v927_v6 = vsel %vm881_vm2, %v875_v4, 0.0 }
  0x24   : > { %961 = vperm.xlu0 %1988, %v866_v30   ;;  %v895_v35 = vadd.f32 %v894_v32, %v893_v29  ;;  %v903_v49 = vrot.slane %v902_v43, 4  ;;  %v912_v59 = vrot.slane %v911_v54, 4  ;;  %v937_v26 = vsel %vm881_vm2, %v878_v24, 0.0 }
  0x25   : > { %v886_v41 = vadd.f32 %v885_v37, %v884_v34  ;;  %v921_v3 = vrot.slane %v920_v0, 4 }
  0x26   : > { %1861 = vmatmul.mubr.msk.f32.gmra.mxu0 %vm430_vm1, %v412_v9  ;;  %v896_v40 = vrot.slane %v895_v35, 2  ;;  %v904_v53 = vadd.f32 %v903_v49, %v902_v43  ;;  %v913_v63 = vadd.f32 %v912_v59, %v911_v54  ;;  %v929_v9 = vadd.f32 %v928_v5, %v927_v6 }
  0x27   : > { %1863 = vmatprep.mubr.msk.f32.mxu0 %vm430_vm1, %v413_v10  ;;  %981 = vperm.xlu1 %1989, %v870_v31   ;;  %v887_v46 = vrot.slane %v886_v41, 2  ;;  %v922_v8 = vadd.f32 %v921_v3, %v920_v0  ;;  %v1738_v0 = vld [vmem:[%s2817_s4] ss:$0 sm:$0xff] }
  0x28   : > { %976 = vperm.xlu0 %1988, %v869_v36   ;;  %v897_v45 = vadd.f32 %v896_v40, %v895_v35  ;;  %v905_v60 = vrot.slane %v904_v53, 2  ;;  %v914_v2 = vrot.slane %v913_v63, 2 }
  0x29   : > { %v888_v52 = vadd.f32 %v887_v46, %v886_v41 }
  0x2a   : > { %1864 = vmatmul.mubr.msk.f32.gmra.mxu0 %vm430_vm1, %v414_v11  ;;  %v898_v50 = vrot.slane %v897_v45, 1  ;;  %v906_v7 = vadd.f32 %v905_v60, %v904_v53  ;;  %v915_v10 = vadd.f32 %v914_v2, %v913_v63  ;;  %v877_v11 = vld [vmem:[%s2279_s18 + $0x60] sm:$0xff] }
  0x2b   : > { %1866 = vmatprep.mubr.msk.f32.mxu0 %vm430_vm1, %v415_v12  ;;  %991 = vperm.xlu1 %1989, %v872_v39   ;;  %v889_v58 = vrot.slane %v888_v52, 1  ;;  %v936_v18 = vsel %vm881_vm2, %v877_v11, 0.0  ;;  %v1581_v63 = vld [vmem:[%s2331_s27] sm:$0xff] }
  0x2c   : > { %986 = vperm.xlu0 %1988, %v871_v44   ;;  %v2302_v56 = vadd.f32 %v898_v50, %v897_v45  ;;  %v907_v12 = vrot.slane %v906_v7, 1  ;;  %v938_v29 = vadd.f32 %v937_v26, %v936_v18 }
  0x2d   : > { %v2307_v62 = vadd.f32 %v889_v58, %v888_v52 }
  0x2e   : > { %1867 = vmatmul.mubr.msk.f32.gmra.mxu0 %vm430_vm1, %v416_v13  ;;  %v923_v13 = vrot.slane %v922_v8, 2  ;;  %v908_v19 = vadd.f32 %v907_v12, %v906_v7  ;;  %v939_v31 = vrot.slane %v938_v29, 4  ;;  %vm1212_vm3 = vcmp.eq.f32.partialorder %v2302_v56, 1.0 }
  0x2f   : > { %1869 = vmatprep.mubr.msk.f32.mxu0 %vm430_vm1, %v417_v14  ;;  %1001 = vperm.xlu1 %1989, %v874_v48   ;;  %v930_v14 = vrot.slane %v929_v9, 4  ;;  %v1220_v44 = vsel %vm1212_vm3, 2.0, %v2302_v56  ;;  %vm1211_vm4 = vcmp.eq.f32.partialorder %v2307_v62, 1.0  ;;  %vm1463_vm3 = vcmask 1047559  }
  0x30   : > { %996 = vperm.xlu0 %1988, %v873_v55   ;;  %v924_v27 = vadd.f32 %v923_v13, %v922_v8  ;;  %v940_v35 = vadd.f32 %v939_v31, %v938_v29  ;;  %v1774_v48 = vadd.f32 -1.0, %v1220_v44  ;;  %v1219_v49 = vsel %vm1211_vm4, 2.0, %v2307_v62 }
  0x31   : > { %v931_v22 = vadd.f32 %v930_v14, %v929_v9  ;;  %vm1213_vm6 = vcmp.eq.f32.partialorder %v908_v19, 1.0  ;;  %v1773_v51 = vadd.f32 -1.0, %v1219_v49 }
  0x32   : > { %1870 = vmatmul.mubr.msk.f32.gmra.mxu0 %vm430_vm1, %v418_v15  ;;  %v916_v15 = vrot.slane %v915_v10, 1  ;;  %v925_v34 = vrot.slane %v924_v27, 1  ;;  %v941_v38 = vrot.slane %v940_v35, 2  ;;  %v1221_v53 = vsel %vm1213_vm6, 2.0, %v908_v19 }
  0x33   : > { %1872 = vmatprep.mubr.msk.f32.mxu0 %vm430_vm1, %v419_v16  ;;  %1130 = vperm.xlu1 %1989, %v2302_v56   ;;  %v880_v16 = vld [vmem:[%s2279_s18 + $0x78] sm:$0xff]  ;;  %v932_v28 = vrot.slane %v931_v22, 2  ;;  %v1775_v55 = vadd.f32 -1.0, %v1221_v53 }
  0x34   : > { %1125 = vperm.xlu0 %1988, %v2307_v62   ;;  %v946_v20 = vsel %vm881_vm2, %v880_v16, 0.0  ;;  %v917_v23 = vadd.f32 %v916_v15, %v915_v10  ;;  %v926_v41 = vadd.f32 %v925_v34, %v924_v27  ;;  %v942_v43 = vadd.f32 %v941_v38, %v940_v35 }
  0x35   : > { %v933_v33 = vadd.f32 %v932_v28, %v931_v22 }
  0x36   : > { %1873 = vmatmul.mubr.msk.f32.gmra.mxu0 %vm430_vm1, %v420_v17  ;;  %v879_v17 = vld [vmem:[%s2279_s18 + $0x70] sm:$0xff]  ;;  %v943_v46 = vrot.slane %v942_v43, 1  ;;  %vm1214_vm5 = vcmp.eq.f32.partialorder %v917_v23, 1.0  ;;  %vm1215_vm8 = vcmp.eq.f32.partialorder %v926_v41, 1.0  ;;  %vm1459_vm1 = vcmask 1045509   ;;  %s1641_s18 = scalar_lea.hbm %s2823_s10, %s1787_s30 }
  0x37   : > { %1011 = vperm.xlu1 %1989, %v876_v1   ;;  %v945_v21 = vsel %vm881_vm2, %v879_v17, 0.0  ;;  %v934_v37 = vrot.slane %v933_v33, 1  ;;  %v1222_v50 = vsel %vm1214_vm5, 2.0, %v917_v23  ;;  %v1223_v57 = vsel %vm1215_vm8, 2.0, %v926_v41 }
  0x38   : > { %1006 = vperm.xlu0 %1988, %v875_v4   ;;  %v947_v25 = vadd.f32 %v946_v20, %v945_v21  ;;  %v944_v47 = vadd.f32 %v943_v46, %v942_v43  ;;  %v1776_v52 = vadd.f32 -1.0, %v1222_v50  ;;  %v1777_v59 = vadd.f32 -1.0, %v1223_v57 }
  0x39   : > { %v935_v39 = vadd.f32 %v934_v37, %v933_v33  ;;  %vm1461_vm2 = vcmask 1046534  }
  0x3a   : > { %v948_v30 = vrot.slane %v947_v25, 4  ;;  %vm1217_vm10 = vcmp.eq.f32.partialorder %v944_v47, 1.0 }
  0x3b   : > { %1016 = vperm.xlu1 %1989, %v877_v11   ;;  %vm1216_vm7 = vcmp.eq.f32.partialorder %v935_v39, 1.0  ;;  %v1225_v61 = vsel %vm1217_vm10, 2.0, %v944_v47 }
  0x3c   : > { %1135 = vperm.xlu0 %1988, %v908_v19   ;;  %v949_v32 = vadd.f32 %v948_v30, %v947_v25  ;;  %v1224_v54 = vsel %vm1216_vm7, 2.0, %v935_v39  ;;  %v1779_v62 = vadd.f32 -1.0, %v1225_v61 }
  0x3d   : > { %v1778_v56 = vadd.f32 -1.0, %v1224_v54 }
  0x3e   : > { %v950_v36 = vrot.slane %v949_v32, 2 }
  0x3f   : > { %1140 = vperm.xlu1 %1989, %v917_v23  }
  0x40   : > { %1021 = vperm.xlu0 %1988, %v878_v24   ;;  %v951_v40 = vadd.f32 %v950_v36, %v949_v32 }
  0x42   : > { %v952_v42 = vrot.slane %v951_v40, 1 }
  0x43   : > { %1031 = vperm.xlu1 %1989, %v880_v16  }
  0x44   : > { %1026 = vperm.xlu0 %1988, %v879_v17   ;;  %v953_v45 = vadd.f32 %v952_v42, %v951_v40 }
  0x46   : > { %vm1218_vm9 = vcmp.eq.f32.partialorder %v953_v45, 1.0 }
  0x47   : > { %1150 = vperm.xlu1 %1989, %v935_v39   ;;  %v1226_v58 = vsel %vm1218_vm9, 2.0, %v953_v45 }
  0x48   : > { %1145 = vperm.xlu0 %1988, %v926_v41   ;;  %v1780_v60 = vadd.f32 -1.0, %v1226_v58  ;;  %v1503_v58 = vld [vmem:[%s2820_s7 + $0x78] sm:$0xff] }
  0x4b   : > { %1160 = vperm.xlu1 %1989, %v953_v45  }
  0x4c   : > { %1155 = vperm.xlu0 %1988, %v944_v47  }
  0x4f   : > { %1330 = vperm.xlu1 %1989, %v1774_v48  }
  0x50   : > { %1325 = vperm.xlu0 %1988, %v1773_v51  }
  0x53   : > { %1340 = vperm.xlu1 %1989, %v1776_v52  }
  0x54   : > { %1335 = vperm.xlu0 %1988, %v1775_v55  }
  0x57   : > { %1350 = vperm.xlu1 %1989, %v1778_v56  }
  0x58   : > { %1345 = vperm.xlu0 %1988, %v1777_v59   ;;  %v2106_v59 = vmov 0.0  }
  0x59   : > { %1907 = vmatprep.subr.mxu0 %v2106_v59 }
  0x5a   : > { %1908 = vmatpush3.msra.mxu0 %v1503_v58 }
  0x5b   : > { %1360 = vperm.xlu1 %1989, %v1780_v60   ;;  %v1502_v60 = vld [vmem:[%s2820_s7 + $0x70] sm:$0xff]  ;;  %1909 = vmatprep.subr.mxu0 %v2106_v59 }
  0x5c   : > { %1355 = vperm.xlu0 %1988, %v1779_v62   ;;  %v1501_v62 = vld [vmem:[%s2820_s7 + $0x68] sm:$0xff]  ;;  %1910 = vmatpush3.msra.mxu0 %v1502_v60 }
  0x5d   : > { %1911 = vmatprep.subr.mxu0 %v2106_v59 }
  0x5e   : > { %1912 = vmatpush3.msra.mxu0 %v1501_v62 }
  0x5f   : > { %1585 = vperm.xlu1 %1989, %v1581_v63   ;;  %1913 = vmatprep.subr.mxu0 %v2106_v59 }
  0x9a   : > { %v2357_v51 = vpop.permute.xlu1 %966 }
  0x9b   : > { %v2353_v49 = vpop.permute.xlu0 %956 }
  0x9e   : > { %v2361_v53 = vpop.permute.xlu1 %971 }
  0x9f   : > { %v2355_v50 = vpop.permute.xlu0 %961 }
  0xa2   : > { %v2365_v55 = vpop.permute.xlu1 %981 }
  0xa3   : > { %v2359_v52 = vpop.permute.xlu0 %976 }
  0xa6   : > { %v2369_v57 = vpop.permute.xlu1 %991 }
  0xa7   : > { %v2363_v54 = vpop.permute.xlu0 %986 }
  0xaa   : > { %v2384_v63 = vpop.permute.xlu1 %1001 }
  0xab   : > { %v2367_v56 = vpop.permute.xlu0 %996 }
  0xaf   : > { %v2378_v61 = vpop.permute.xlu0 %1125 }
  0xb0   : > { %1994 = vrcp.f32 %v2378_v61  ;;  %v1492_v61 = vld [vmem:[%s2820_s7 + $0x20] sm:$0xff] }
  0xda   : > { %v1853_v1 = vpop.f32.mrf.mxu0 }
  0xdb   : > { %v555_v2 = vadd.f32 %v1853_v1, %v1738_v0  ;;  %v1500_v1 = vld [vmem:[%s2820_s7 + $0x60] sm:$0xff] }
  0xdc   : > { %v549_v3 = vpop.f32.mrf.mxu0  ;;  %1914 = vmatpush3.msra.mxu0 %v1500_v1 }
  0xdd   : > { %v550_v4 = vadd.f32 %v1738_v0, %v549_v3  ;;  %v629_v7 = vmax.f32 %v555_v2, 0.0  ;;  %1915 = vmatprep.subr.mxu0 %v2106_v59 }
  0xde   : > { %v1856_v5 = vpop.f32.mrf.mxu0 }
  0xdf   : > { %v628_v6 = vmax.f32 %v550_v4, 0.0  ;;  %v565_v8 = vadd.f32 %v1856_v5, %v1738_v0  ;;  %v1499_v4 = vld [vmem:[%s2820_s7 + $0x58] sm:$0xff] }
  0xe0   : > { %v559_v9 = vpop.f32.mrf.mxu0  ;;  %1916 = vmatpush3.msra.mxu0 %v1499_v4 }
  0xe1   : > { %v560_v10 = vadd.f32 %v1738_v0, %v559_v9  ;;  %1883 = vmatprep.mubr.msk.f32.mxu1 %vm655_vm11, %v628_v6  ;;  %v631_v13 = vmax.f32 %v565_v8, 0.0  ;;  %v2402_v6 = vpop.permute.xlu0 %1006  ;;  %v1498_v9 = vld [vmem:[%s2820_s7 + $0x50] sm:$0xff]  ;;  %1917 = vmatprep.subr.mxu0 %v2106_v59 }
  0xe2   : > { %v1859_v11 = vpop.f32.mrf.mxu0  ;;  %1884 = vmatmul.mubr.msk.f32.vlgmr.msra.gmra.mxu1 %vm655_vm11, %v629_v7  ;;  %1918 = vmatpush3.msra.mxu0 %v1498_v9 }
  0xe3   : > { %v630_v12 = vmax.f32 %v560_v10, 0.0  ;;  %v575_v14 = vadd.f32 %v1859_v11, %v1738_v0  ;;  %v1131_v10 = vpop.permute.xlu1 %1130  ;;  %1919 = vmatprep.subr.mxu0 %v2106_v59 }
  0xe4   : > { %v569_v15 = vpop.f32.mrf.mxu0  ;;  %1996 = vrcp.f32 %v1131_v10 }
  0xe5   : > { %v570_v16 = vadd.f32 %v1738_v0, %v569_v15  ;;  %1886 = vmatprep.mubr.msk.f32.mxu1 %vm655_vm11, %v630_v12  ;;  %v633_v19 = vmax.f32 %v575_v14, 0.0  ;;  %v1497_v15 = vld [vmem:[%s2820_s7 + $0x48] sm:$0xff] }
  0xe6   : > { %v1862_v17 = vpop.f32.mrf.mxu0  ;;  %1887 = vmatmul.mubr.msk.f32.gmra.mxu1 %vm655_vm11, %v631_v13  ;;  %1920 = vmatpush3.msra.mxu0 %v1497_v15 }
  0xe7   : > { %v632_v18 = vmax.f32 %v570_v16, 0.0  ;;  %v585_v20 = vadd.f32 %v1862_v17, %v1738_v0  ;;  %1921 = vmatprep.subr.mxu0 %v2106_v59 }
  0xe8   : > { %v579_v21 = vpop.f32.mrf.mxu0 }
  0xe9   : > { %v580_v22 = vadd.f32 %v1738_v0, %v579_v21  ;;  %1889 = vmatprep.mubr.msk.f32.mxu1 %vm655_vm11, %v632_v18  ;;  %v635_v25 = vmax.f32 %v585_v20, 0.0  ;;  %v1496_v20 = vld [vmem:[%s2820_s7 + $0x40] sm:$0xff] }
  0xea   : > { %v1865_v23 = vpop.f32.mrf.mxu0  ;;  %1890 = vmatmul.mubr.msk.f32.gmra.mxu1 %vm655_vm11, %v633_v19  ;;  %1922 = vmatpush3.msra.mxu0 %v1496_v20 }
  0xeb   : > { %v634_v24 = vmax.f32 %v580_v22, 0.0  ;;  %v595_v26 = vadd.f32 %v1865_v23, %v1738_v0  ;;  %v1136_v23 = vpop.permute.xlu0 %1135  ;;  %1923 = vmatprep.subr.mxu0 %v2106_v59 }
  0xec   : > { %v589_v27 = vpop.f32.mrf.mxu0  ;;  %1998 = vrcp.f32 %v1136_v23 }
  0xed   : > { %v590_v28 = vadd.f32 %v1738_v0, %v589_v27  ;;  %1892 = vmatprep.mubr.msk.f32.mxu1 %vm655_vm11, %v634_v24  ;;  %v637_v31 = vmax.f32 %v595_v26, 0.0 }
  0xee   : > { %v1868_v29 = vpop.f32.mrf.mxu0  ;;  %1893 = vmatmul.mubr.msk.f32.gmra.mxu1 %vm655_vm11, %v635_v25 }
  0xef   : > { %v636_v30 = vmax.f32 %v590_v28, 0.0  ;;  %v605_v32 = vadd.f32 %v1868_v29, %v1738_v0  ;;  %v1495_v28 = vld [vmem:[%s2820_s7 + $0x38] sm:$0xff]  ;;  %v2447_v29 = vpop.permute.xlu1 %1011 }
  0xf0   : > { %v599_v33 = vpop.f32.mrf.mxu0  ;;  %1924 = vmatpush3.msra.mxu0 %v1495_v28 }
  0xf1   : > { %v600_v34 = vadd.f32 %v1738_v0, %v599_v33  ;;  %1895 = vmatprep.mubr.msk.f32.mxu1 %vm655_vm11, %v636_v30  ;;  %v639_v37 = vmax.f32 %v605_v32, 0.0  ;;  %1925 = vmatprep.subr.mxu0 %v2106_v59 }
  0xf2   : > { %v1871_v35 = vpop.f32.mrf.mxu0  ;;  %1896 = vmatmul.mubr.msk.f32.gmra.mxu1 %vm655_vm11, %v637_v31 }
  0xf3   : > { %v638_v36 = vmax.f32 %v600_v34, 0.0  ;;  %v615_v38 = vadd.f32 %v1871_v35, %v1738_v0  ;;  %v1494_v35 = vld [vmem:[%s2820_s7 + $0x30] sm:$0xff]  ;;  %v2487_v62 = vpop.permute.xlu1 %1016 }
  0xf4   : > { %v609_v39 = vpop.f32.mrf.mxu0  ;;  %1926 = vmatpush3.msra.mxu0 %v1494_v35 }
  0xf5   : > { %v610_v40 = vadd.f32 %v1738_v0, %v609_v39  ;;  %1898 = vmatprep.mubr.msk.f32.mxu1 %vm655_vm11, %v638_v36  ;;  %v641_v43 = vmax.f32 %v615_v38, 0.0  ;;  %1927 = vmatprep.subr.mxu0 %v2106_v59 }
  0xf6   : > { %v1874_v41 = vpop.f32.mrf.mxu0  ;;  %1899 = vmatmul.mubr.msk.f32.gmra.mxu1 %vm655_vm11, %v639_v37 }
  0xf7   : > { %v640_v42 = vmax.f32 %v610_v40, 0.0  ;;  %v625_v44 = vadd.f32 %v1874_v41, %v1738_v0 }
  0xf8   : > { %v619_v45 = vpop.f32.mrf.mxu0 }
  0xf9   : > { %v620_v46 = vadd.f32 %v1738_v0, %v619_v45  ;;  %1901 = vmatprep.mubr.msk.f32.mxu1 %vm655_vm11, %v640_v42  ;;  %v643_v48 = vmax.f32 %v625_v44, 0.0  ;;  %v2389_v0 = vld [vmem:[%s2819_s6] ss:$0 sm:$0xff] }
  0xfa   : > { %1902 = vmatmul.mubr.msk.f32.gmra.mxu1 %vm655_vm11, %v641_v43  ;;  %v1493_v43 = vld [vmem:[%s2820_s7 + $0x28] sm:$0xff] }
  0xfb   : > { %v642_v47 = vmax.f32 %v620_v46, 0.0  ;;  %1928 = vmatpush3.msra.mxu0 %v1493_v43 }
  0xfc   : > { %1929 = vmatprep.subr.mxu0 %v2106_v59 }
  0xfd   : > { %1904 = vmatprep.mubr.msk.f32.mxu1 %vm655_vm11, %v642_v47  ;;  %v2474_v47 = vpop.permute.xlu0 %1021  ;;  %1930 = vmatpush3.msra.mxu0 %v1492_v61 }
  0xfe   : > { %1905 = vmatmul.mubr.msk.f32.gmra.mxu1 %vm655_vm11, %v643_v48  ;;  %1931 = vmatprep.subr.mxu0 %v2106_v59  ;;  %vm2107_vm11 = vmmov 0  }
  0xff   : > { %1939 = vmatprep.mubr.msk.f32.mxu0 %vm2107_vm11, %v2106_v59 }
 0x1a2   : > { %v1885_v2 = vpop.f32.mrf.mxu1 }
 0x1a3   : > { %v2396_v3 = vadd.f32 %v1885_v2, %v2389_v0 }
 0x1a4   : > { %v770_v5 = vpop.f32.mrf.mxu1 }
 0x1a5   : > { %v850_v7 = vmax.f32 %v2396_v3, 0.0  ;;  %v2406_v8 = vadd.f32 %v2389_v0, %v770_v5 }
 0x1a6   : > { %v1888_v11 = vpop.f32.mrf.mxu1 }
 0x1a7   : > { %v1035_v12 = vmul.f32 %v2355_v50, %v850_v7  ;;  %v849_v13 = vmax.f32 %v2406_v8, 0.0  ;;  %v2417_v14 = vadd.f32 %v1888_v11, %v2389_v0 }
 0x1a8   : > { %v780_v16 = vpop.f32.mrf.mxu1 }
 0x1a9   : > { %v1034_v17 = vmul.f32 %v2353_v49, %v849_v13  ;;  %v852_v18 = vmax.f32 %v2417_v14, 0.0  ;;  %v2428_v19 = vadd.f32 %v2389_v0, %v780_v16  ;;  %v1052_v21 = vsel %vm1050_vm12, %v1035_v12, 0.0 }
 0x1aa   : > { %v1891_v22 = vpop.f32.mrf.mxu1 }
 0x1ab   : > { %v1051_v24 = vsel %vm1050_vm12, %v1034_v17, 0.0  ;;  %v1037_v25 = vmul.f32 %v2361_v53, %v852_v18  ;;  %v851_v26 = vmax.f32 %v2428_v19, 0.0  ;;  %v2441_v27 = vadd.f32 %v1891_v22, %v2389_v0 }
 0x1ac   : > { %v1053_v30 = vadd.f32 %v1052_v21, %v1051_v24  ;;  %v790_v31 = vpop.f32.mrf.mxu1 }
 0x1ad   : > { %v1036_v32 = vmul.f32 %v2357_v51, %v851_v26  ;;  %v854_v33 = vmax.f32 %v2441_v27, 0.0  ;;  %v2454_v34 = vadd.f32 %v2389_v0, %v790_v31  ;;  %v1061_v37 = vsel %vm1050_vm12, %v1037_v25, 0.0 }
 0x1ae   : > { %v1054_v36 = vrot.slane %v1053_v30, 4  ;;  %v1894_v38 = vpop.f32.mrf.mxu1 }
 0x1af   : > { %v1060_v39 = vsel %vm1050_vm12, %v1036_v32, 0.0  ;;  %v1039_v40 = vmul.f32 %v2365_v55, %v854_v33  ;;  %v853_v41 = vmax.f32 %v2454_v34, 0.0  ;;  %v2467_v42 = vadd.f32 %v1894_v38, %v2389_v0  ;;  %v2507_v32 = vpop.permute.xlu0 %1026  ;;  %v1141_v38 = vpop.permute.xlu1 %1140 }
 0x1b0   : > { %v1055_v44 = vadd.f32 %v1054_v36, %v1053_v30  ;;  %v1062_v45 = vadd.f32 %v1061_v37, %v1060_v39  ;;  %v800_v46 = vpop.f32.mrf.mxu1  ;;  %2000 = vrcp.f32 %v1141_v38 }
 0x1b1   : > { %v1038_v48 = vmul.f32 %v2359_v52, %v853_v41  ;;  %v856_v58 = vmax.f32 %v2467_v42, 0.0  ;;  %v2481_v60 = vadd.f32 %v2389_v0, %v800_v46  ;;  %v1070_v4 = vsel %vm1050_vm12, %v1039_v40, 0.0 }
 0x1b2   : > { %v1056_v1 = vrot.slane %v1055_v44, 2  ;;  %v1063_v2 = vrot.slane %v1062_v45, 4  ;;  %v1897_v5 = vpop.f32.mrf.mxu1 }
 0x1b3   : > { %v1069_v9 = vsel %vm1050_vm12, %v1038_v48, 0.0  ;;  %v1041_v11 = vmul.f32 %v2369_v57, %v856_v58  ;;  %v855_v12 = vmax.f32 %v2481_v60, 0.0  ;;  %v2496_v15 = vadd.f32 %v1897_v5, %v2389_v0 }
 0x1b4   : > { %v1057_v10 = vadd.f32 %v1056_v1, %v1055_v44  ;;  %v1064_v16 = vadd.f32 %v1063_v2, %v1062_v45  ;;  %v1071_v17 = vadd.f32 %v1070_v4, %v1069_v9  ;;  %v810_v20 = vpop.f32.mrf.mxu1 }
 0x1b5   : > { %v1040_v21 = vmul.f32 %v2363_v54, %v855_v12  ;;  %v858_v22 = vmax.f32 %v2496_v15, 0.0  ;;  %v2504_v24 = vadd.f32 %v2389_v0, %v810_v20  ;;  %v1079_v35 = vsel %vm1050_vm12, %v1041_v11, 0.0  ;;  %v1995_v20 = vpop.eup %1994 }
 0x1b6   : > { %v1058_v25 = vrot.slane %v1057_v10, 1  ;;  %v1065_v28 = vrot.slane %v1064_v16, 2  ;;  %v1072_v30 = vrot.slane %v1071_v17, 4  ;;  %v1900_v31 = vpop.f32.mrf.mxu1 }
 0x1b7   : > { %v1078_v23 = vsel %vm1050_vm12, %v1040_v21, 0.0  ;;  %v1043_v36 = vmul.f32 %v2384_v63, %v858_v22  ;;  %v857_v37 = vmax.f32 %v2504_v24, 0.0  ;;  %v2516_v44 = vadd.f32 %v1900_v31, %v2389_v0  ;;  %v1146_v21 = vpop.permute.xlu0 %1145 }
 0x1b8   : > { %v1066_v39 = vadd.f32 %v1065_v28, %v1064_v16  ;;  %v1073_v40 = vadd.f32 %v1072_v30, %v1071_v17  ;;  %v1080_v43 = vadd.f32 %v1079_v35, %v1078_v23  ;;  %v820_v45 = vpop.f32.mrf.mxu1  ;;  %v1059_v61 = vadd.f32 %v1058_v25, %v1057_v10  ;;  %v1997_v23 = vpop.eup %1996 }
 0x1b9   : > { %v1042_v46 = vmul.f32 %v2367_v56, %v857_v37  ;;  %v2522_v48 = vadd.f32 %v2389_v0, %v820_v45  ;;  %v1088_v16 = vsel %vm1050_vm12, %v1043_v36, 0.0  ;;  %v860_v17 = vmax.f32 %v2516_v44, 0.0  ;;  %v2536_v45 = vpop.permute.xlu1 %1031 }
 0x1ba   : > { %v1067_v1 = vrot.slane %v1066_v39, 1  ;;  %v1074_v2 = vrot.slane %v1073_v40, 2  ;;  %v1081_v4 = vrot.slane %v1080_v43, 4  ;;  %2002 = vrcp.f32 %v1146_v21 }
 0x1bb   : > { %v1087_v5 = vsel %vm1050_vm12, %v1042_v46, 0.0  ;;  %v859_v9 = vmax.f32 %v2522_v48, 0.0  ;;  %v2528_v35 = vmul.f32 %v1995_v20, %v1059_v61  ;;  %v1045_v36 = vmul.f32 %v2447_v29, %v860_v17 }
 0x1bc   : > { %v1075_v11 = vadd.f32 %v1074_v2, %v1073_v40  ;;  %v1068_v28 = vadd.f32 %v1067_v1, %v1066_v39  ;;  %v1082_v30 = vadd.f32 %v1081_v4, %v1080_v43  ;;  %v1089_v31 = vadd.f32 %v1088_v16, %v1087_v5  ;;  %v1999_v1 = vpop.eup %1998 }
 0x1bd   : > { %v1044_v25 = vmul.f32 %v2402_v6, %v859_v9  ;;  %v1179_v2 = vsub.f32 %v849_v13, %v2528_v35  ;;  %v1180_v5 = vsub.f32 %v850_v7, %v2528_v35  ;;  %v1903_v7 = vpop.f32.mrf.mxu1 }
 0x1be   : > { %v1076_v10 = vrot.slane %v1075_v11, 1  ;;  %v1083_v38 = vrot.slane %v1082_v30, 2  ;;  %v1090_v40 = vrot.slane %v1089_v31, 4  ;;  %v2538_v39 = vmul.f32 %v1997_v23, %v1068_v28  ;;  %v1151_v23 = vpop.permute.xlu1 %1150 }
 0x1bf   : > { %v1096_v4 = vsel %vm1050_vm12, %v1044_v25, 0.0  ;;  %v1097_v28 = vsel %vm1050_vm12, %v1045_v36, 0.0  ;;  %v1195_v19 = vmul.f32 %v1179_v2, %v2353_v49  ;;  %2004 = vrcp.f32 %v1151_v23 }
 0x1c0   : > { %v1077_v43 = vadd.f32 %v1076_v10, %v1075_v11  ;;  %v1084_v46 = vadd.f32 %v1083_v38, %v1082_v30  ;;  %v1091_v61 = vadd.f32 %v1090_v40, %v1089_v31  ;;  %v1181_v11 = vsub.f32 %v851_v26, %v2538_v39  ;;  %v2001_v30 = vpop.eup %2000 }
 0x1c1   : > { %v1182_v8 = vsub.f32 %v852_v18, %v2538_v39  ;;  %v1098_v3 = vadd.f32 %v1097_v28, %v1096_v4  ;;  %v1196_v26 = vmul.f32 %v1180_v5, %v2355_v50  ;;  %v2567_v34 = vadd.f32 %v1903_v7, %v2389_v0 }
 0x1c2   : > { %v2547_v16 = vmul.f32 %v1999_v1, %v1077_v43  ;;  %v1085_v20 = vrot.slane %v1084_v46, 1  ;;  %v1092_v21 = vrot.slane %v1091_v61, 2  ;;  %v1197_v38 = vmul.f32 %v1181_v11, %v2357_v51  ;;  %v830_v51 = vpop.f32.mrf.mxu1 }
 0x1c3   : > { %v1198_v27 = vmul.f32 %v1182_v8, %v2361_v53  ;;  %v1099_v40 = vrot.slane %v1098_v3, 4  ;;  %v1228_v1 = vmul.f32 %v1196_v26, %v1196_v26 }
 0x1c4   : > { %v1183_v13 = vsub.f32 %v853_v41, %v2547_v16  ;;  %v1184_v31 = vsub.f32 %v854_v33, %v2547_v16  ;;  %v1086_v10 = vadd.f32 %v1085_v20, %v1084_v46  ;;  %v1093_v25 = vadd.f32 %v1092_v21, %v1091_v61  ;;  %v1156_v41 = vpop.permute.xlu0 %1155  ;;  %v1161_v20 = vpop.permute.xlu1 %1160 }
 0x1c5   : > { %v1227_v61 = vmul.f32 %v1195_v19, %v1195_v19  ;;  %v1229_v4 = vmul.f32 %v1197_v38, %v1197_v38  ;;  %v1230_v60 = vmul.f32 %v1198_v27, %v1198_v27  ;;  %v1100_v5 = vadd.f32 %v1099_v40, %v1098_v3 }
 0x1c6   : > { %v2564_v14 = vmul.f32 %v2001_v30, %v1086_v10  ;;  %v1094_v18 = vrot.slane %v1093_v25, 1  ;;  %v1199_v33 = vmul.f32 %v1183_v13, %v2359_v52  ;;  %v1200_v36 = vmul.f32 %v1184_v31, %v2365_v55 }
 0x1c7   : > { %v2003_v46 = vpop.eup %2002  ;;  %v862_v55 = vmax.f32 %v2567_v34, 0.0  ;;  %v2588_v21 = vadd.f32 %v2389_v0, %v830_v51  ;;  %v1244_v28 = vsel %vm1050_vm12, %v1228_v1, 0.0  ;;  %v1101_v8 = vrot.slane %v1100_v5, 2 }
 0x1c8   : > { %v1185_v49 = vsub.f32 %v855_v12, %v2564_v14  ;;  %v1186_v50 = vsub.f32 %v856_v58, %v2564_v14  ;;  %v1095_v43 = vadd.f32 %v1094_v18, %v1093_v25  ;;  %v1231_v12 = vmul.f32 %v1199_v33, %v1199_v33  ;;  %v1906_v25 = vpop.f32.mrf.mxu1  ;;  %v1331_v18 = vpop.permute.xlu1 %1330 }
 0x1c9   : > { %v1232_v42 = vmul.f32 %v1200_v36, %v1200_v36  ;;  %v1047_v24 = vmul.f32 %v2474_v47, %v862_v55  ;;  %v1253_v30 = vsel %vm1050_vm12, %v1230_v60, 0.0  ;;  %v1102_v23 = vadd.f32 %v1101_v8, %v1100_v5 }
 0x1ca   : > { %v1201_v53 = vmul.f32 %v1185_v49, %v2363_v54  ;;  %v1202_v52 = vmul.f32 %v1186_v50, %v2369_v57  ;;  %v2581_v2 = vmul.f32 %v2003_v46, %v1095_v43  ;;  %v1326_v54 = vpop.permute.xlu0 %1325  ;;  %v1243_v57 = vsel %vm1050_vm12, %v1227_v61, 0.0  ;;  %v840_v46 = vpop.f32.mrf.mxu1 }
 0x1cb   : > { %v1261_v31 = vsel %vm1050_vm12, %v1231_v12, 0.0  ;;  %v1262_v15 = vsel %vm1050_vm12, %v1232_v42, 0.0  ;;  %v861_v19 = vmax.f32 %v2588_v21, 0.0  ;;  %v1103_v33 = vrot.slane %v1102_v23, 1 }
 0x1cc   : > { %v1187_v58 = vsub.f32 %v857_v37, %v2581_v2  ;;  %v1188_v11 = vsub.f32 %v858_v22, %v2581_v2  ;;  %v1233_v13 = vmul.f32 %v1201_v53, %v1201_v53  ;;  %v1234_v3 = vmul.f32 %v1202_v52, %v1202_v52 }
 0x1cd   : > { %v1252_v37 = vsel %vm1050_vm12, %v1229_v4, 0.0  ;;  %v1046_v40 = vmul.f32 %v2487_v62, %v861_v19  ;;  %2006 = vrcp.f32 %v1161_v20  ;;  %v1263_v50 = vadd.f32 %v1262_v15, %v1261_v31 }
 0x1ce   : > { %v1203_v7 = vmul.f32 %v1187_v58, %v2367_v56  ;;  %v1204_v10 = vmul.f32 %v1188_v11, %v2384_v63  ;;  %v1245_v56 = vadd.f32 %v1244_v28, %v1243_v57  ;;  %v1270_v38 = vsel %vm1050_vm12, %v1233_v13, 0.0  ;;  %v2005_v63 = vpop.eup %2004  ;;  %v1336_v36 = vpop.permute.xlu0 %1335 }
 0x1cf   : > { %v1271_v27 = vsel %vm1050_vm12, %v1234_v3, 0.0  ;;  %v1254_v49 = vadd.f32 %v1253_v30, %v1252_v37  ;;  %v1106_v43 = vsel %vm1050_vm12, %v1047_v24, 0.0  ;;  %v1104_v51 = vadd.f32 %v1103_v33, %v1102_v23  ;;  %v1341_v13 = vpop.permute.xlu1 %1340 }
 0x1d0   : > { %v1235_v22 = vmul.f32 %v1203_v7, %v1203_v7  ;;  %v1236_v26 = vmul.f32 %v1204_v10, %v1204_v10  ;;  %v1105_v53 = vsel %vm1050_vm12, %v1046_v40, 0.0  ;;  %2008 = vrcp.f32 %v1156_v41 }
 0x1d1   : > { %v1272_v52 = vadd.f32 %v1271_v27, %v1270_v38  ;;  %v1107_v4 = vadd.f32 %v1106_v43, %v1105_v53  ;;  %v2615_v60 = vadd.f32 %v1906_v25, %v2389_v0  ;;  %2010 = vrcp.f32 %v1331_v18 }
 0x1d2   : > { %v1279_v61 = vsel %vm1050_vm12, %v1235_v22, 0.0  ;;  %v1280_v1 = vsel %vm1050_vm12, %v1236_v26, 0.0  ;;  %v1246_v12 = vrot.slane %v1245_v56, 4  ;;  %v2617_v5 = vmul.f32 %v2005_v63, %v1104_v51  ;;  %v1346_v3 = vpop.permute.xlu0 %1345 }
 0x1d3   : > { %v2620_v20 = vadd.f32 %v2389_v0, %v840_v46  ;;  %v1255_v42 = vrot.slane %v1254_v49, 4  ;;  %v1281_v58 = vadd.f32 %v1280_v1, %v1279_v61  ;;  %v1108_v57 = vrot.slane %v1107_v4, 4  ;;  %v1351_v27 = vpop.permute.xlu1 %1350 }
 0x1d4   : > { %v864_v28 = vmax.f32 %v2615_v60, 0.0  ;;  %2012 = vrcp.f32 %v1326_v54  ;;  %v1264_v11 = vrot.slane %v1263_v50, 4  ;;  %v1189_v41 = vsub.f32 %v859_v9, %v2617_v5 }
 0x1d5   : > { %v1190_v8 = vsub.f32 %v860_v17, %v2617_v5  ;;  %v1273_v7 = vrot.slane %v1272_v52, 4  ;;  %v1109_v0 = vadd.f32 %v1108_v57, %v1107_v4  ;;  %v863_v37 = vmax.f32 %v2620_v20, 0.0 }
 0x1d6   : > { %v1049_v24 = vmul.f32 %v2536_v45, %v864_v28  ;;  %2014 = vrcp.f32 %v1341_v13  ;;  %v1247_v54 = vadd.f32 %v1246_v12, %v1245_v56  ;;  %v1205_v30 = vmul.f32 %v1189_v41, %v2402_v6  ;;  %v1356_v33 = vpop.permute.xlu0 %1355 }
 0x1d7   : > { %v1206_v48 = vmul.f32 %v1190_v8, %v2447_v29  ;;  %v1256_v9 = vadd.f32 %v1255_v42, %v1254_v49  ;;  %v1282_v31 = vrot.slane %v1281_v58, 4  ;;  %v1110_v44 = vrot.slane %v1109_v0, 2 }
 0x1d8   : > { %v1048_v17 = vmul.f32 %v2507_v32, %v863_v37  ;;  %2016 = vrcp.f32 %v1336_v36  ;;  %v1265_v10 = vadd.f32 %v1264_v11, %v1263_v50  ;;  %v1237_v25 = vmul.f32 %v1205_v30, %v1205_v30 }
 0x1d9   : > { %v1238_v15 = vmul.f32 %v1206_v48, %v1206_v48  ;;  %v1274_v22 = vadd.f32 %v1273_v7, %v1272_v52  ;;  %v1111_v23 = vadd.f32 %v1110_v44, %v1109_v0  ;;  %v1115_v26 = vsel %vm1050_vm12, %v1049_v24, 0.0 }
 0x1da   : > { %v1114_v56 = vsel %vm1050_vm12, %v1048_v17, 0.0  ;;  %v1248_v6 = vrot.slane %v1247_v54, 2  ;;  %v1288_v29 = vsel %vm1050_vm12, %v1237_v25, 0.0  ;;  %v1257_v40 = vrot.slane %v1256_v9, 2  ;;  %v2007_v50 = vpop.eup %2006 }
 0x1db   : > { %v1289_v18 = vsel %vm1050_vm12, %v1238_v15, 0.0  ;;  %v1116_v38 = vadd.f32 %v1115_v26, %v1114_v56  ;;  %v1283_v63 = vadd.f32 %v1282_v31, %v1281_v58  ;;  %v1112_v49 = vrot.slane %v1111_v23, 1 }
 0x1dc   : > { %v1290_v36 = vadd.f32 %v1289_v18, %v1288_v29  ;;  %2018 = vrcp.f32 %v1351_v27  ;;  %v1266_v43 = vrot.slane %v1265_v10, 2  ;;  %v1275_v61 = vrot.slane %v1274_v22, 2 }
 0x1dd   : > { %v1117_v46 = vrot.slane %v1116_v38, 4  ;;  %2020 = vrcp.f32 %v1346_v3  ;;  %v1113_v51 = vadd.f32 %v1112_v49, %v1111_v23  ;;  %v2009_v53 = vpop.eup %2008  ;;  %v1249_v52 = vadd.f32 %v1248_v6, %v1247_v54 }
 0x1de   : > { %v1291_v1 = vrot.slane %v1290_v36, 4  ;;  %2022 = vrcp.f32 %v1356_v33  ;;  %v2011_v12 = vpop.eup %2010  ;;  %v1258_v42 = vadd.f32 %v1257_v40, %v1256_v9  ;;  %v1284_v57 = vrot.slane %v1283_v63, 2 }
 0x1df   : > { %v1118_v4 = vadd.f32 %v1117_v46, %v1116_v38  ;;  %v1176_v41 = vmul.f32 %v2009_v53, %v1113_v51  ;;  %v1267_v58 = vadd.f32 %v1266_v43, %v1265_v10  ;;  %v1276_v7 = vadd.f32 %v1275_v61, %v1274_v22 }
 0x1e0   : > { %v1292_v11 = vadd.f32 %v1291_v1, %v1290_v36  ;;  %v1250_v54 = vrot.slane %v1249_v52, 1  ;;  %v1259_v9 = vrot.slane %v1258_v42, 1  ;;  %v1285_v31 = vadd.f32 %v1284_v57, %v1283_v63 }
 0x1e1   : > { %v1119_v8 = vrot.slane %v1118_v4, 2  ;;  %v2013_v13 = vpop.eup %2012  ;;  %v1191_v3 = vsub.f32 %v861_v19, %v1176_v41  ;;  %v1192_v24 = vsub.f32 %v862_v55, %v1176_v41  ;;  %v1452_v10 = vsel %vm1451_vm13, %v2538_v39, %v2528_v35 }
 0x1e2   : > { %v1293_v0 = vrot.slane %v1292_v11, 2  ;;  %v1268_v21 = vrot.slane %v1267_v58, 1  ;;  %v1277_v55 = vrot.slane %v1276_v7, 1  ;;  %v1251_v23 = vadd.f32 %v1250_v54, %v1249_v52 }
 0x1e3   : > { %v1120_v30 = vadd.f32 %v1119_v8, %v1118_v4  ;;  %v2015_v48 = vpop.eup %2014  ;;  %v1207_v44 = vmul.f32 %v1191_v3, %v2487_v62  ;;  %v1208_v17 = vmul.f32 %v1192_v24, %v2474_v47  ;;  %v1454_v26 = vsel %vm1453_vm14, %v2547_v16, %v1452_v10 }
 0x1e4   : > { %v1294_v25 = vadd.f32 %v1293_v0, %v1292_v11  ;;  %v1260_v62 = vadd.f32 %v1259_v9, %v1258_v42  ;;  %v1286_v47 = vrot.slane %v1285_v31, 1  ;;  %v1456_v39 = vsel %vm1455_vm15, %v2564_v14, %v1454_v26  ;;  %v1361_v11 = vpop.permute.xlu1 %1360 }
 0x1e5   : > { %v1121_v19 = vrot.slane %v1120_v30, 1  ;;  %v2017_v34 = vpop.eup %2016  ;;  %v1239_v15 = vmul.f32 %v1207_v44, %v1207_v44  ;;  %v1240_v22 = vmul.f32 %v1208_v17, %v1208_v17  ;;  %v1269_v27 = vadd.f32 %v1268_v21, %v1267_v58 }
 0x1e6   : > { %v1278_v33 = vadd.f32 %v1277_v55, %v1276_v7  ;;  %v1295_v40 = vrot.slane %v1294_v25, 1  ;;  %v1458_v16 = vsel %vm1457_vm0, %v2581_v2, %v1456_v39  ;;  %v1364_v46 = vmul.f32 %v2013_v13, %v1251_v23 }
 0x1e7   : > { %v1122_v56 = vadd.f32 %v1121_v19, %v1120_v30  ;;  %v1297_v6 = vsel %vm1050_vm12, %v1239_v15, 0.0  ;;  %v1298_v35 = vsel %vm1050_vm12, %v1240_v22, 0.0  ;;  %v1460_v14 = vsel %vm1459_vm1, %v2617_v5, %v1458_v16 }
 0x1e8   : > { %v1299_v29 = vadd.f32 %v1298_v35, %v1297_v6  ;;  %v1366_v61 = vmul.f32 %v2011_v12, %v1260_v62  ;;  %v1287_v1 = vadd.f32 %v1286_v47, %v1285_v31  ;;  %v1462_v51 = vsel %vm1461_vm2, %v1176_v41, %v1460_v14 }
 0x1e9   : > { %v1178_v18 = vmul.f32 %v2007_v50, %v1122_v56  ;;  %v2019_v38 = vpop.eup %2018  ;;  %v1296_v4 = vadd.f32 %v1295_v40, %v1294_v25  ;;  %v1370_v60 = vmul.f32 %v2015_v48, %v1278_v33  ;;  %v2670_v57 = vadd.f32 1e-31, %v1364_v46 }
 0x1ea   : > { %v2021_v63 = vpop.eup %2020  ;;  %v1300_v36 = vrot.slane %v1299_v29, 4  ;;  %v2672_v12 = vadd.f32 1e-31, %v1366_v61  ;;  %2024 = vrcp.f32 %v1361_v11 }
 0x1eb   : > { %v1193_v49 = vsub.f32 %v863_v37, %v1178_v18  ;;  %v1194_v43 = vsub.f32 %v864_v28, %v1178_v18  ;;  %v2023_v50 = vpop.eup %2022  ;;  %v1464_v20 = vsel %vm1463_vm3, %v1178_v18, %v1462_v51  ;;  %v1368_v37 = vmul.f32 %v2017_v34, %v1269_v27  ;;  %v1489_v51 = vld [vmem:[%s2820_s7 + $0x8] sm:$0xff] }
 0x1ec   : > { %v1301_v53 = vadd.f32 %v1300_v36, %v1299_v29  ;;  %1466 = vst.msk [vmem:[#allocation2] sm:$0xff] %vm1050_vm12, %v1464_v20  ;;  %v1372_v41 = vmul.f32 %v2021_v63, %v1287_v1  ;;  %v1374_v13 = vmul.f32 %v2019_v38, %v1296_v4  ;;  %v2678_v0 = vadd.f32 1e-31, %v1370_v60  ;;  %v1491_v36 = vld [vmem:[%s2820_s7 + $0x18] sm:$0xff]  ;;  %v1488_v4 = vld [vmem:[%s2820_s7] sm:$0xff] }
 0x1ed   : > { %v1209_v2 = vmul.f32 %v1193_v49, %v2507_v32  ;;  %v1210_v52 = vmul.f32 %v1194_v43, %v2536_v45  ;;  %v2676_v8 = vadd.f32 1e-31, %v1368_v37  ;;  %2026 = vrsqrt.f32 %v2670_v57  ;;  %v1490_v49 = vld [vmem:[%s2820_s7 + $0x10] sm:$0xff]  ;;  %1932 = vmatpush3.msra.mxu0 %v1491_v36 }
 0x1ee   : > { %v1302_v28 = vrot.slane %v1301_v53, 2  ;;  %2028 = vrsqrt.f32 %v2672_v12  ;;  %v2682_v54 = vadd.f32 1e-31, %v1372_v41  ;;  %v2685_v48 = vadd.f32 1e-31, %v1374_v13  ;;  %1933 = vmatprep.subr.mxu0 %v2106_v59 }
 0x1ef   : > { %v1241_v5 = vmul.f32 %v1209_v2, %v1209_v2  ;;  %v1242_v42 = vmul.f32 %v1210_v52, %v1210_v52  ;;  %2030 = vrsqrt.f32 %v2676_v8  ;;  %vm1389_vm4 = vcmp.eq.f32.partialorder %v2670_v57, inf  ;;  %1934 = vmatpush3.msra.mxu0 %v1490_v49 }
 0x1f0   : > { %v1303_v58 = vadd.f32 %v1302_v28, %v1301_v53  ;;  %2032 = vrsqrt.f32 %v2678_v0  ;;  %vm1391_vm5 = vcmp.eq.f32.partialorder %v2670_v57, 0.0  ;;  %v1392_v18 = vand.u32 2147483648, %v2670_v57  ;;  %1935 = vmatprep.subr.mxu0 %v2106_v59 }
 0x1f1   : > { %v1306_v32 = vsel %vm1050_vm12, %v1241_v5, 0.0  ;;  %v1307_v45 = vsel %vm1050_vm12, %v1242_v42, 0.0  ;;  %2034 = vrsqrt.f32 %v2682_v54  ;;  %vm1396_vm6 = vcmp.eq.f32.partialorder %v2672_v12, inf  ;;  %1936 = vmatpush3.msra.mxu0 %v1489_v51 }
 0x1f2   : > { %v1308_v7 = vadd.f32 %v1307_v45, %v1306_v32  ;;  %v1304_v3 = vrot.slane %v1303_v58, 1  ;;  %2036 = vrsqrt.f32 %v2685_v48  ;;  %vm1398_vm7 = vcmp.eq.f32.partialorder %v2672_v12, 0.0  ;;  %1937 = vmatprep.subr.mxu0 %v2106_v59 }
 0x1f3   : > { %v1399_v38 = vand.u32 2147483648, %v2672_v12  ;;  %vm1403_vm8 = vcmp.eq.f32.partialorder %v2676_v8, inf  ;;  %vm1410_vm9 = vcmp.eq.f32.partialorder %v2678_v0, inf  ;;  %vm1405_vm10 = vcmp.eq.f32.partialorder %v2676_v8, 0.0  ;;  %1938 = vmatpush3.msra.mxu0 %v1488_v4 }
 0x1f4   : > { %v1309_v24 = vrot.slane %v1308_v7, 4  ;;  %v1305_v30 = vadd.f32 %v1304_v3, %v1303_v58  ;;  %v1406_v43 = vand.u32 2147483648, %v2676_v8  ;;  %v1413_v1 = vand.u32 2147483648, %v2678_v0 }
 0x1f5   : > { %vm1417_vm12 = vcmp.eq.f32.partialorder %v2682_v54, inf  ;;  %v1420_v20 = vand.u32 2147483648, %v2682_v54  ;;  %v1427_v60 = vand.u32 2147483648, %v2685_v48  ;;  %v2109_v59 = vmov 1  }
 0x1f6   : > { %v1310_v9 = vadd.f32 %v1309_v24, %v1308_v7  ;;  %v1376_v31 = vmul.f32 %v2023_v50, %v1305_v30  ;;  %v2108_v7 = vmov 2   ;;  %1990 = vset.pattern.permute.xlu0 %v2109_v59  ;;  %v2042_v24 = vld [vmem:[%s2331_s27] sm:$0xff]  ;;  %s1730_s27 = sshll.u32 %s384_s12, 3 }
 0x1f7   : > { %v2025_v34 = vpop.eup %2024  ;;  %1991 = vset.pattern.permute.xlu1 %v2108_v7  ;;  %s386_s25 = scalar_lea.vmem [#allocation3], %s1730_s27 }
 0x1f8   : > { %v1311_v44 = vrot.slane %v1310_v9, 2  ;;  %v2688_v17 = vadd.f32 1e-31, %v1376_v31  ;;  %1607 = vperm.xlu1 %1991, %v2042_v24   ;;  %s1643_s26 = sshll.u32 %s386_s25, 4  ;;  %s1644_s26 = int_to_ptr.vmem [resolvable:$true] %s1643_s26 }
 0x1f9   : > { %s2043_s21 = scalar_lea.vmem %s1644_s26, 128 }
 0x1fa   : > { %v1312_v10 = vadd.f32 %v1311_v44, %v1310_v9  ;;  %2038 = vrsqrt.f32 %v2688_v17  ;;  %v2027_v25 = vpop.eup %2026  ;;  %v2111_v9 = vmov 3   ;;  %p2044_p12 = scmp.ne.s32.totalorder %s1644_s26, %s2043_s21 }
 0x1fb   : > { %v2029_v15 = vpop.eup %2028  ;;  %v1388_v56 = vmul.f32 %v2027_v25, %v2670_v57 }
 0x1fc   : > { %v1313_v21 = vrot.slane %v1312_v10, 1  ;;  %v2031_v23 = vpop.eup %2030  ;;  %v1395_v62 = vmul.f32 %v2029_v15, %v2672_v12  ;;  %1992 = vset.pattern.permute.xlu1 %v2111_v9  ;;  %p2045_p13 = pnand %p2044_p12, %p2206_p5 }
 0x1fd   : > { %v2033_v26 = vpop.eup %2032  ;;  %v1402_v6 = vmul.f32 %v2031_v23, %v2676_v8  ;;  %v1390_v27 = vsel %vm1389_vm4, %v2670_v57, %v1388_v56  ;;  %vm1412_vm4 = vcmp.eq.f32.partialorder %v2678_v0, 0.0  ;;  %v1434_v57 = vand.u32 2147483648, %v2688_v17  ;;  %1618 = vperm.xlu1 %1992, %v2042_v24  }
 0x1fe   : > { %v1314_v19 = vadd.f32 %v1313_v21, %v1312_v10  ;;  %v2035_v47 = vpop.eup %2034  ;;  %v1409_v39 = vmul.f32 %v2033_v26, %v2678_v0  ;;  %v1397_v33 = vsel %vm1396_vm6, %v2672_v12, %v1395_v62  ;;  %v1393_v46 = vsel %vm1391_vm5, %v1392_v18, %v1390_v27  ;;  %v1782_v21 = vld [vmem:[%s2821_s8] ss:$0 sm:$0xff]  ;;  %v1784_v26 = vld [vmem:[%s2821_s8 + $0x2] ss:$0 sm:$0xff]  ;;  %v1785_v62 = vld [vmem:[%s2821_s8 + $0x3] ss:$0 sm:$0xff]  ;;  %p2046_p0 = pneg %p2045_p13 }
 0x1ff   : > { %v2037_v35 = vpop.eup %2036  ;;  %v1416_v40 = vmul.f32 %v2035_v47, %v2682_v54  ;;  %v1404_v16 = vsel %vm1403_vm8, %v2676_v8, %v1402_v6  ;;  %v1400_v61 = vsel %vm1398_vm7, %v1399_v38, %v1397_v33  ;;  %vm1424_vm5 = vcmp.eq.f32.partialorder %v2685_v48, inf }
 0x200   : > { %v1378_v55 = vmul.f32 %v2025_v34, %v1314_v19  ;;  %v1423_v63 = vmul.f32 %v2037_v35, %v2685_v48  ;;  %v1411_v14 = vsel %vm1410_vm9, %v2678_v0, %v1409_v39  ;;  %v1407_v53 = vsel %vm1405_vm10, %v1406_v43, %v1404_v16  ;;  %v1781_v19 = vld [vmem:[%s2822_s9] ss:$0 sm:$0xff]  ;;  %v1783_v34 = vld [vmem:[%s2821_s8 + $0x1] ss:$0 sm:$0xff] }
 0x201   : > { %v1418_v2 = vsel %vm1417_vm12, %v2682_v54, %v1416_v40  ;;  %v1414_v52 = vsel %vm1412_vm4, %v1413_v1, %v1411_v14  ;;  %vm1431_vm6 = vcmp.eq.f32.partialorder %v2688_v17, inf  ;;  %vm1419_vm7 = vcmp.eq.f32.partialorder %v2682_v54, 0.0 }
 0x202   : > { %v2693_v22 = vadd.f32 1e-31, %v1378_v55  ;;  %v1425_v37 = vsel %vm1424_vm5, %v2685_v48, %v1423_v63  ;;  %v1475_v5 = vsel %vm1451_vm13, %v1400_v61, %v1393_v46  ;;  %v1421_v42 = vsel %vm1419_vm7, %v1420_v20, %v1418_v2 }
 0x203   : > { %vm1426_vm8 = vcmp.eq.f32.partialorder %v2685_v48, 0.0  ;;  %v1476_v12 = vsel %vm1453_vm14, %v1407_v53, %v1475_v5  ;;  %vm1433_vm9 = vcmp.eq.f32.partialorder %v2688_v17, 0.0 }
 0x204   : > { %2040 = vrsqrt.f32 %v2693_v22  ;;  %v1428_v41 = vsel %vm1426_vm8, %v1427_v60, %v1425_v37  ;;  %v1477_v58 = vsel %vm1455_vm15, %v1414_v52, %v1476_v12  ;;  %vm1438_vm13 = vcmp.eq.f32.partialorder %v2693_v22, inf }
 0x205   : > { %v1441_v8 = vand.u32 2147483648, %v2693_v22  ;;  %v1478_v13 = vsel %vm1457_vm0, %v1421_v42, %v1477_v58  ;;  %vm1440_vm14 = vcmp.eq.f32.partialorder %v2693_v22, 0.0  ;;  %vm1485_vm15 = vcmask 1048064  }
 0x206   : > { %v1479_v3 = vsel %vm1459_vm1, %v1428_v41, %v1478_v13 }
 0x207   : > { %v2039_v29 = vpop.eup %2038 }
 0x208   : > { %v1430_v50 = vmul.f32 %v2039_v29, %v2688_v17 }
 0x20a   : > { %v1432_v28 = vsel %vm1431_vm6, %v2688_v17, %v1430_v50  ;;  %v1586_v17 = vpop.permute.xlu1 %1585 }
 0x20b   : > { %v1435_v32 = vsel %vm1433_vm9, %v1434_v57, %v1432_v28  ;;  %v1592_v15 = vmul.f32 %v1782_v21, %v1586_v17 }
 0x20c   : > { %v1480_v30 = vsel %vm1461_vm2, %v1435_v32, %v1479_v3 }
 0x211   : > { %v2041_v11 = vpop.eup %2040 }
 0x212   : > { %v1437_v45 = vmul.f32 %v2041_v11, %v2693_v22 }
 0x214   : > { %v1439_v0 = vsel %vm1438_vm13, %v2693_v22, %v1437_v45 }
 0x215   : > { %v1442_v54 = vsel %vm1440_vm14, %v1441_v8, %v1439_v0 }
 0x216   : > { %v1481_v48 = vsel %vm1463_vm3, %v1442_v54, %v1480_v30 }
 0x217   : > { %1482 = vrot.lane.b32.xlu0 %v1481_v48, %s2110_s29  ;;  %s2112_s29 = smov [#allocation3]  }
 0x218   : > { %s2047_s0 = sshll.u32 %s2112_s29, 4  ;;  %s2048_s0 = int_to_ptr.vmem [resolvable:$false] %s2047_s0 }
 0x219   : > { %s2049_s17 = scalar_lea.vmem %s2048_s0, 256  ;;  %p2050_p1 = scmp.lt.s32.totalorder %s1644_s26, %s2048_s0 }
 0x21a   : > { %p2051_p2 = scmp.lt.s32.totalorder %s2049_s17, %s2043_s21 }
 0x21b   : > { %1596 = vperm.xlu0 %1990, %v2042_v24  }
 0x21c   : > { %p2052_p3 = por %p2051_p2, %p2050_p1 }
 0x21e   : > { %p2053_p4 = pnand %p2052_p3, %p2046_p0 }
 0x21f   : > { %1993 = vset.pattern.permute.xlu0 %v2111_v9 }
 0x273   : > { %v1608_v10 = vpop.permute.xlu1 %1607 }
 0x274   : > { %v1614_v35 = vmul.f32 %v1784_v26, %v1608_v10 }
 0x278   : > { %v1619_v47 = vpop.permute.xlu1 %1618 }
 0x279   : > { %v1625_v29 = vmul.f32 %v1785_v62, %v1619_v47 }
 0x289   : > { %v1483_v31 = vpop.permute.xlu0 %1482 }
 0x28a   : > { %1486 = vst.msk [vmem:[#allocation2] sm:$0xff] %vm1485_vm15, %v1483_v31 }
 0x291   : > { %v1487_v44 = vld [vmem:[#allocation2] sm:$0xff] }
 0x292   : > { %1940 = vmatmul.mubr.f32.vlgmr.msra.gmra.mxu0 %v1487_v44 }
 0x296   : > { %v1597_v55 = vpop.permute.xlu0 %1596 }
 0x297   : > { %v1603_v23 = vmul.f32 %v1783_v34, %v1597_v55 }
 0x352   : > { %v1577_v25 = vpop.f32.mrf.mxu0 }
 0x353   : > { %v1578_v22 = vadd.f32 %v1781_v19, %v1577_v25 }
 0x354   : > { %v1941_v56 = vpop.f32.mrf.mxu0 }
 0x355   : > { %v1593_v6 = vadd.f32 %v1592_v15, %v1578_v22 }
 0x357   : > { %v1604_v39 = vadd.f32 %v1603_v23, %v1593_v6 }
 0x359   : > { %v1615_v18 = vadd.f32 %v1614_v35, %v1604_v39 }
 0x35b   : > { %v1626_v38 = vadd.f32 %v1625_v29, %v1615_v18 }
 0x35d   : > { %v1627_v27 = vmax.f32 %v1626_v38, 0.0 }
 0x35f   : > { %1628 = vst [vmem:[%s386_s25] sm:$0xff] %v1627_v27 }
 0x360   : > { %2056 = shalt.err (!%p2053_p4)
}
 0x361   : > { %s2057_s27 = scalar_lea.hbm %s1641_s18, 128  ;;  %s2061_s25 = scalar_lea.hbm %s2823_s10, 256 }
 0x362   : > { %p2058_p7 = scmp.ne.s32.totalorder %s1641_s18, %s2057_s27  ;;  %p2062_p10 = scmp.lt.s32.totalorder %s1641_s18, %s2823_s10 }
 0x363   : > { %p2063_p11 = scmp.lt.s32.totalorder %s2061_s25, %s2057_s27 }
 0x364   : > { %p2059_p8 = pnand %p2058_p7, %p2206_p5 }
 0x365   : > { %p2064_p12 = por %p2063_p11, %p2062_p10 }
 0x366   : > { %p2060_p9 = pneg %p2059_p8 }
 0x368   : > { %p2065_p13 = pnand %p2064_p12, %p2060_p9 }
 0x36a   : > { %2068 = shalt.err (!%p2065_p13)
}
 0x36b   : > { %1942 = dma.vmem_to_hbm [thread:$0]  (%p2206_p5), %s1644_s26, 128, %s1641_s18, %s1630_s20  }
 0x36c PF: > { %p1948_p0 = scmp.ge.s32.totalorder %s2103_s16, 2  ;;  %s1655_s0 = sand.u32 1, %s2091_s13  }
 0x36d   : > { %s1656_s21 = scalar_lea.sflag [#allocation4], %s1655_s0 }
 0x36e   : > { %p1945_p1 = pnand %p1948_p0, %p2210_p6 }
 0x370   : > { %p1946_p2 = pneg %p1945_p1 }
 0x372   : > { %2086 = dma.done.wait (%p1946_p2), %s1656_s21, 128  }
 0x373   : > { %2088 = vsyncadd (%p1946_p2), %s1656_s21, 4294967168  ;;  %p20_p3 = scmp.ge.s32.totalorder %s2193_s19, 4   ;;  %s2828_s13 = smov %s2095_s14 }
 0x374   : > { %s2829_s14 = smov %s2099_s15  ;;  %s2830_s15 = smov %s2204_s22 }
 0x375   : > { %s2831_s16 = smov %s2193_s19  ;;  %22 = sbr.rel (!%p20_p3) target bundleno = 5 (0x5), region = 101 }
 0x37a   :  { %1661 = vsyncpa [#allocation4], 1 }
 0x37b   :  { %1663 = vsyncpa [#allocation4 + $0x1], 1 }

</bundles_post_ra>
